<compile_context>
chip_gen: v7x
topology: tpu7x:2x2x1
jax: 0.10.0
libtpu: 0.0.40
codegen_flags: <defaults>
</compile_context>

<pallas_src>
import functools

import jax
import jax.numpy as jnp
from jax.experimental import pallas as pl
from jax.experimental.pallas import tpu as pltpu


# Fast-pathway hyperparameters (shapes consistent with SlowFast beta=1/8 stem)
C_IN = 3
C_STEM = 8          # fast stem channels (64 // 8)
C_OUT = 32          # final fast feature channels (synthetic stand-in)
STEM_K = (5, 7, 7)
STEM_S = (1, 2, 2)
STEM_P = (2, 3, 3)


def _round_up(x, m):
    return ((x + m - 1) // m) * m


# ----------------------------------------------------------------------------
# Fused Pallas kernel:
#   stem GEMM + bias + ReLU  ->  point-wise GEMM + bias + ReLU  ->  GAP accum
# ----------------------------------------------------------------------------
def _fused_kernel(cols_ref, w_stem_ref, b_stem_ref, w_pw_ref, b_pw_ref,
                  o_ref, acc_ref, *, rows_per_batch, block_rows,
                  steps_per_split, needs_mask, inv_count):
    c = pl.program_id(1)          # row-split ("core") axis
    s = pl.program_id(2)          # row-tile axis (reduction, "arbitrary")

    @pl.when(s == 0)
    def _():
        acc_ref[...] = jnp.zeros_like(acc_ref)

    # --- stem conv as GEMM on the MXU (bf16 operands, f32 accumulation) ---
    a = cols_ref[0]                                           # (tm, Kp) bf16
    h = jnp.dot(a, w_stem_ref[...], preferred_element_type=jnp.float32)
    h = jnp.maximum(h + b_stem_ref[...], 0.0)                 # (tm, C_STEM)

    # --- fused point-wise expansion conv (tiny weights, VMEM-resident) ---
    h2 = jnp.dot(h, w_pw_ref[...], preferred_element_type=jnp.float32)
    h2 = jnp.maximum(h2 + b_pw_ref[...], 0.0)                 # (tm, C_OUT)

    partial = jnp.sum(h2, axis=0, keepdims=True)              # (1, C_OUT)

    if needs_mask:
        # Mask only the single ragged tail tile; all other steps accumulate
        # unmasked (no per-step iota/compare/select).
        row_start = (c * steps_per_split + s) * block_rows

        @pl.when(row_start + block_rows <= rows_per_batch)
        def _():
            acc_ref[...] += partial

        @pl.when(row_start + block_rows > rows_per_batch)
        def _():
            row = row_start + jax.lax.broadcasted_iota(jnp.int32, h2.shape, 0)
            acc_ref[...] += jnp.sum(
                jnp.where(row < rows_per_batch, h2, 0.0),
                axis=0, keepdims=True)
    else:
        acc_ref[...] += partial

    @pl.when(s == pl.num_programs(2) - 1)
    def _():
        o_ref[0] = (acc_ref[...] * inv_count).astype(o_ref.dtype)


def _default_tm():
    """Row tile from the chip's VMEM capacity (v5e/v6e: 128 MiB, v7x: 64 MiB).

    Bigger tiles amortize the ~0.35 us per-grid-step pipeline overhead; the
    v7x budget is re-derived (not reused from 128-MiB parts)."""
    try:
        vmem = pltpu.get_tpu_info().vmem_capacity_bytes
    except Exception:  # conservative default if the query is unavailable
        vmem = 64 * 1024 * 1024
    return 4096 if vmem >= 100 * 1024 * 1024 else 2048


def fused_stem_pw_gap(cols, w_stem_2d, b_stem, w_pw, b_pw, *, tm=None,
                      n_split=2):
    """cols: (N, rows, Kp) bf16 with Kp % 128 == 0.  Returns (N, C_OUT) f32."""
    n_batch, rows_per_batch, Kp = cols.shape
    c_stem = w_stem_2d.shape[1]
    c_out = w_pw.shape[1]
    assert w_stem_2d.shape[0] == Kp

    if tm is None:
        tm = _default_tm()
    if rows_per_batch < 16:
        n_split = 1
    # Row tile: multiple of 8 sublanes, no larger than one split's share.
    tm = max(8, min(tm, _round_up(-(-rows_per_batch // n_split), 8)))
    s_pad = _round_up(rows_per_batch, n_split * tm)
    steps_per_split = s_pad // (n_split * tm)
    needs_mask = s_pad != rows_per_batch

    if needs_mask:
        # Cheap zero row pad (< n_split*tm rows); padded rows are masked in
        # the kernel's tail-tile branch (relu(bias) of zero rows is nonzero).
        cols = jnp.pad(cols, ((0, 0), (0, s_pad - rows_per_batch), (0, 0)))

    w_stem_p = w_stem_2d.astype(jnp.bfloat16)        # tiny (Kp, C_STEM)
    b_stem2 = b_stem.reshape(1, c_stem).astype(jnp.float32)
    w_pw_f = w_pw.astype(jnp.float32)
    b_pw2 = b_pw.reshape(1, c_out).astype(jnp.float32)

    # VMEM budget: double-buffered cols tile + weights + f32 intermediates,
    # capped at 48 MiB so the same code is safe on v7x's 64 MiB VMEM.
    block_bytes = tm * Kp * 2
    vmem_limit = int(min(48 * 2**20,
                         max(32 * 2**20, 4 * block_bytes + (4 << 20))))

    grid = (n_batch, n_split, steps_per_split)

    out = pl.pallas_call(
        functools.partial(
            _fused_kernel,
            rows_per_batch=rows_per_batch,
            block_rows=tm,
            steps_per_split=steps_per_split,
            needs_mask=needs_mask,
            inv_count=float(1.0 / rows_per_batch)),
        out_shape=jax.ShapeDtypeStruct((n_batch * n_split, 1, c_out),
                                       jnp.float32),
        grid_spec=pltpu.PrefetchScalarGridSpec(
            num_scalar_prefetch=0,
            grid=grid,
            in_specs=[
                # Streaming bf16 row tiles of the im2col matrix.
                pl.BlockSpec((1, tm, Kp),
                             lambda b, c, s: (b, c * steps_per_split + s, 0)),
                # Weights / biases: fully resident, fetched once.
                pl.BlockSpec((Kp, c_stem), lambda b, c, s: (0, 0)),
                pl.BlockSpec((1, c_stem), lambda b, c, s: (0, 0)),
                pl.BlockSpec((c_stem, c_out), lambda b, c, s: (0, 0)),
                pl.BlockSpec((1, c_out), lambda b, c, s: (0, 0)),
            ],
            out_specs=pl.BlockSpec((1, 1, c_out),
                                   lambda b, c, s: (b * n_split + c, 0, 0)),
            scratch_shapes=[pltpu.VMEM((1, c_out), jnp.float32)],
        ),
        compiler_params=pltpu.CompilerParams(
            dimension_semantics=("parallel", "parallel", "arbitrary"),
            vmem_limit_bytes=vmem_limit),
    )(cols, w_stem_p, b_stem2, w_pw_f, b_pw2)

    # Per-split partial sums are already scaled by 1/rows; summing the split
    # axis yields the global mean (GAP).
    return jnp.sum(out.reshape(n_batch, n_split, c_out), axis=1)


# ----------------------------------------------------------------------------
# Glue: im2col for 3-D conv (channels-last), parameters, forward
# ----------------------------------------------------------------------------
def im2col_3d(x, ksize, stride, pad, pad_k_to=None):
    """x: (N, T, H, W, C) -> cols (N, To*Ho*Wo, K), plus (To, Ho, Wo).

    If pad_k_to is given, the K pad (to a lane-aligned width) is folded into
    the single patch-stack materialization via extra all-zero taps, so the
    inflated tensor is written to HBM exactly once, already in x.dtype.
    """
    kt, kh, kw = ksize
    st, sh, sw = stride
    pt, ph, pw = pad
    x = jnp.pad(x, ((0, 0), (pt, pt), (ph, ph), (pw, pw), (0, 0)))
    N, T, H, W, C = x.shape
    To = (T - kt) // st + 1
    Ho = (H - kh) // sh + 1
    Wo = (W - kw) // sw + 1
    patches = []
    for dt in range(kt):
        for dh in range(kh):
            for dw in range(kw):
                patches.append(x[:, dt:dt + To * st:st,
                                 dh:dh + Ho * sh:sh,
                                 dw:dw + Wo * sw:sw, :])
    if pad_k_to is not None:
        k = len(patches) * C
        extra = pad_k_to - k
        assert extra >= 0 and extra % C == 0, (k, pad_k_to)
        patches.extend([jnp.zeros_like(patches[0])] * (extra // C))
    cols = jnp.stack(patches, axis=-2)              # (N,To,Ho,Wo,taps,C)
    cols = cols.reshape(N, To * Ho * Wo, len(patches) * C)
    return cols, (To, Ho, Wo)


def init_params(key):
    k1, k2, k3, k4 = jax.random.split(key, 4)
    kt, kh, kw = STEM_K
    # stem weight stored as (kt, kh, kw, C_in, C_stem) to match im2col ordering
    w_stem = jax.random.normal(k1, (kt, kh, kw, C_IN, C_STEM), jnp.float32) * 0.05
    b_stem = jax.random.normal(k2, (C_STEM,), jnp.float32) * 0.01
    w_pw = jax.random.normal(k3, (C_STEM, C_OUT), jnp.float32) * 0.1
    b_pw = jax.random.normal(k4, (C_OUT,), jnp.float32) * 0.01
    return dict(w_stem=w_stem, b_stem=b_stem, w_pw=w_pw, b_pw=b_pw)


def slowfast_forward(x_slow, x_fast, params, *, tm=None):
    """x_slow/x_fast: PyTorch-style (N, C, T, H, W). Returns fast feature (N, C_OUT)."""
    del x_slow  # slow pathway does not influence the fast-pathway output
    # NCTHW -> NTHWC, cast to bf16 BEFORE im2col so the inflated tensor is
    # materialized once, in bf16 (halves the dominant HBM read vs f32).
    xf = jnp.transpose(x_fast, (0, 2, 3, 4, 1)).astype(jnp.bfloat16)

    K = STEM_K[0] * STEM_K[1] * STEM_K[2] * C_IN
    Kp = _round_up(K, 128)

    cols, _ = im2col_3d(xf, STEM_K, STEM_S, STEM_P, pad_k_to=Kp)

    w2d = params["w_stem"].reshape(K, C_STEM)
    w2d = jnp.pad(w2d, ((0, Kp - K), (0, 0)))        # tiny, matches zero taps

    return fused_stem_pw_gap(cols, w2d, params["b_stem"],
                             params["w_pw"], params["b_pw"], tm=tm)


def reference_forward(x_slow, x_fast, params):
    """Plain-JAX reference (inputs/weights quantized to bf16 like the kernel)."""
    del x_slow
    xf = (jnp.transpose(x_fast, (0, 2, 3, 4, 1))
          .astype(jnp.bfloat16).astype(jnp.float32))
    cols, _ = im2col_3d(xf, STEM_K, STEM_S, STEM_P)
    w_q = (params["w_stem"].reshape(-1, C_STEM)
           .astype(jnp.bfloat16).astype(jnp.float32))
    h = jnp.maximum(cols @ w_q + params["b_stem"], 0.0)
    h = jnp.maximum(h @ params["w_pw"] + params["b_pw"], 0.0)
    return jnp.mean(h, axis=1)


if __name__ == "__main__":
    key = jax.random.PRNGKey(0)
    k_params, k_slow, k_fast = jax.random.split(key, 3)
    params = init_params(k_params)

    # Small SlowFast-style dual-pathway input: fast has 4x the temporal frames.
    x_slow = jax.random.normal(k_slow, (2, 3, 2, 16, 16), jnp.float32)
    x_fast = jax.random.normal(k_fast, (2, 3, 8, 16, 16), jnp.float32)

    out = jax.block_until_ready(slowfast_forward(x_slow, x_fast, params))
    ref = reference_forward(x_slow, x_fast, params)

    assert out.shape == (2, C_OUT), out.shape
    assert jnp.allclose(out, ref, atol=5e-3, rtol=5e-3), (
        "mismatch vs reference, max abs err = "
        f"{float(jnp.max(jnp.abs(out - ref)))}")

    print("KERNEL_OK")
</pallas_src>

<mosaic_0001>
module attributes {stable_mosaic.version = 11 : i64} {
  func.func @_fused_kernel(%arg0: i32, %arg1: i32, %arg2: i32, %arg3: memref<1x256x768xbf16, #tpu.memory_space<vmem>>, %arg4: memref<768x8xbf16, #tpu.memory_space<vmem>>, %arg5: memref<1x8xf32, #tpu.memory_space<vmem>>, %arg6: memref<8x32xf32, #tpu.memory_space<vmem>>, %arg7: memref<1x32xf32, #tpu.memory_space<vmem>>, %arg8: memref<1x1x32xf32, #tpu.memory_space<vmem>>, %arg9: memref<1x32xf32, #tpu.memory_space<vmem>>) attributes {dimension_semantics = [#tpu.dimension_semantics<parallel>, #tpu.dimension_semantics<parallel>, #tpu.dimension_semantics<arbitrary>], iteration_bounds = array<i64: 2, 2, 1>, scalar_prefetch = 0 : i64, scratch_operands = 1 : i64, tpu.core_type = #tpu.core_type<tc>, window_params = [{transform_indices = @transform_0, window_bounds = array<i64: 1, 256, 768>}, {pipeline_mode = #tpu.pipeline_mode<synchronous>, transform_indices = @transform_1, window_bounds = array<i64: 768, 8>}, {pipeline_mode = #tpu.pipeline_mode<synchronous>, transform_indices = @transform_2, window_bounds = array<i64: 1, 8>}, {pipeline_mode = #tpu.pipeline_mode<synchronous>, transform_indices = @transform_3, window_bounds = array<i64: 8, 32>}, {pipeline_mode = #tpu.pipeline_mode<synchronous>, transform_indices = @transform_4, window_bounds = array<i64: 1, 32>}, {transform_indices = @transform_5, window_bounds = array<i64: 1, 1, 32>}]} {
    %c0_i32 = arith.constant 0 : i32
    %0 = arith.cmpi eq, %arg2, %c0_i32 : i32
    %1 = arith.extui %0 : i1 to i32
    %c0_i32_0 = arith.constant 0 : i32
    %2 = arith.cmpi ne, %1, %c0_i32_0 : i32
    scf.if %2 {
      %cst_21 = arith.constant 0.000000e+00 : f32
      %27 = vector.broadcast %cst_21 : f32 to vector<1x32xf32>
      %c0_22 = arith.constant 0 : index
      %c0_23 = arith.constant 0 : index
      %28 = vector.load %arg9[%c0_22, %c0_23] : memref<1x32xf32, #tpu.memory_space<vmem>>, vector<1x32xf32>
      tpu.vector_store %arg9[%c0_22, %c0_23], %27 {strides = array<i32>} : memref<1x32xf32, #tpu.memory_space<vmem>>, vector<1x32xf32>,
    } else {
    }
    %c0 = arith.constant 0 : index
    %c0_1 = arith.constant 0 : index
    %c0_2 = arith.constant 0 : index
    %3 = vector.load %arg3[%c0, %c0_1, %c0_2] : memref<1x256x768xbf16, #tpu.memory_space<vmem>>, vector<1x256x768xbf16>
    %4 = vector.shape_cast %3 : vector<1x256x768xbf16> to vector<256x768xbf16>
    %c0_3 = arith.constant 0 : index
    %c0_4 = arith.constant 0 : index
    %5 = vector.load %arg4[%c0_3, %c0_4] : memref<768x8xbf16, #tpu.memory_space<vmem>>, vector<768x8xbf16>
    %cst = arith.constant dense<0.000000e+00> : vector<256x8xf32>
    %6 = tpu.matmul %4, %5, %cst {dimension_numbers = #tpu.dot_dimension_numbers<[1], [0], [0], [1], [0, 0, 1, 1], [], []>} : vector<256x768xbf16>, vector<768x8xbf16>, vector<256x8xf32> -> vector<256x8xf32>
    %c0_5 = arith.constant 0 : index
    %c0_6 = arith.constant 0 : index
    %7 = vector.load %arg5[%c0_5, %c0_6] : memref<1x8xf32, #tpu.memory_space<vmem>>, vector<1x8xf32>
    %8 = vector.broadcast %7 : vector<1x8xf32> to vector<256x8xf32>
    %9 = arith.addf %6, %8 : vector<256x8xf32>
    %cst_7 = arith.constant 0.000000e+00 : f32
    %10 = vector.broadcast %cst_7 : f32 to vector<256x8xf32>
    %11 = arith.maximumf %9, %10 : vector<256x8xf32>
    %c0_8 = arith.constant 0 : index
    %c0_9 = arith.constant 0 : index
    %12 = vector.load %arg6[%c0_8, %c0_9] : memref<8x32xf32, #tpu.memory_space<vmem>>, vector<8x32xf32>
    %cst_10 = arith.constant dense<0.000000e+00> : vector<256x32xf32>
    %13 = tpu.matmul %11, %12, %cst_10 {dimension_numbers = #tpu.dot_dimension_numbers<[1], [0], [0], [1], [0, 0, 1, 1], [], []>} : vector<256x8xf32>, vector<8x32xf32>, vector<256x32xf32> -> vector<256x32xf32>
    %c0_11 = arith.constant 0 : index
    %c0_12 = arith.constant 0 : index
    %14 = vector.load %arg7[%c0_11, %c0_12] : memref<1x32xf32, #tpu.memory_space<vmem>>, vector<1x32xf32>
    %15 = vector.broadcast %14 : vector<1x32xf32> to vector<256x32xf32>
    %16 = arith.addf %13, %15 : vector<256x32xf32>
    %cst_13 = arith.constant 0.000000e+00 : f32
    %17 = vector.broadcast %cst_13 : f32 to vector<256x32xf32>
    %18 = arith.maximumf %16, %17 : vector<256x32xf32>
    %cst_14 = arith.constant dense<0.000000e+00> : vector<32xf32>
    %19 = vector.multi_reduction <add>, %18, %cst_14 [0] : vector<256x32xf32> to vector<32xf32>
    %20 = vector.shape_cast %19 : vector<32xf32> to vector<1x32xf32>
    %c0_15 = arith.constant 0 : index
    %c0_16 = arith.constant 0 : index
    %21 = vector.load %arg9[%c0_15, %c0_16] : memref<1x32xf32, #tpu.memory_space<vmem>>, vector<1x32xf32>
    %22 = arith.addf %21, %20 : vector<1x32xf32>
    %c0_17 = arith.constant 0 : index
    %c0_18 = arith.constant 0 : index
    %23 = vector.load %arg9[%c0_17, %c0_18] : memref<1x32xf32, #tpu.memory_space<vmem>>, vector<1x32xf32>
    tpu.vector_store %arg9[%c0_17, %c0_18], %22 {strides = array<i32>} : memref<1x32xf32, #tpu.memory_space<vmem>>, vector<1x32xf32>,
    %c0_i32_19 = arith.constant 0 : i32
    %24 = arith.cmpi eq, %arg2, %c0_i32_19 : i32
    %25 = arith.extui %24 : i1 to i32
    %c0_i32_20 = arith.constant 0 : i32
    %26 = arith.cmpi ne, %25, %c0_i32_20 : i32
    scf.if %26 {
      %c0_21 = arith.constant 0 : index
      %c0_22 = arith.constant 0 : index
      %27 = vector.load %arg9[%c0_21, %c0_22] : memref<1x32xf32, #tpu.memory_space<vmem>>, vector<1x32xf32>
      %cst_23 = arith.constant 0.001953125 : f32
      %28 = vector.broadcast %cst_23 : f32 to vector<1x32xf32>
      %29 = arith.mulf %27, %28 : vector<1x32xf32>
      %c0_24 = arith.constant 0 : index
      %c0_25 = arith.constant 0 : index
      %c0_26 = arith.constant 0 : index
      %30 = vector.load %arg8[%c0_24, %c0_25, %c0_26] : memref<1x1x32xf32, #tpu.memory_space<vmem>>, vector<1x1x32xf32>
      %31 = vector.shape_cast %30 : vector<1x1x32xf32> to vector<1x32xf32>
      %32 = vector.shape_cast %29 : vector<1x32xf32> to vector<1x1x32xf32>
      tpu.vector_store %arg8[%c0_24, %c0_25, %c0_26], %32 {strides = array<i32>} : memref<1x1x32xf32, #tpu.memory_space<vmem>>, vector<1x1x32xf32>,
    } else {
    }
    return
  }
  func.func @transform_0(%arg0: i32, %arg1: i32, %arg2: i32) -> (i32, i32, i32) {
    %c1_i32 = arith.constant 1 : i32
    %0 = arith.muli %arg1, %c1_i32 : i32
    %1 = arith.addi %0, %arg2 : i32
    %c0_i32 = arith.constant 0 : i32
    %c0_i32_0 = arith.constant 0 : i32
    return %arg0, %1, %c0_i32 : i32, i32, i32
  }
  func.func @transform_1(%arg0: i32, %arg1: i32, %arg2: i32) -> (i32, i32) {
    %c0_i32 = arith.constant 0 : i32
    %c0_i32_0 = arith.constant 0 : i32
    %c0_i32_1 = arith.constant 0 : i32
    return %c0_i32, %c0_i32_0 : i32, i32
  }
  func.func @transform_2(%arg0: i32, %arg1: i32, %arg2: i32) -> (i32, i32) {
    %c0_i32 = arith.constant 0 : i32
    %c0_i32_0 = arith.constant 0 : i32
    %c0_i32_1 = arith.constant 0 : i32
    return %c0_i32, %c0_i32_0 : i32, i32
  }
  func.func @transform_3(%arg0: i32, %arg1: i32, %arg2: i32) -> (i32, i32) {
    %c0_i32 = arith.constant 0 : i32
    %c0_i32_0 = arith.constant 0 : i32
    %c0_i32_1 = arith.constant 0 : i32
    return %c0_i32, %c0_i32_0 : i32, i32
  }
  func.func @transform_4(%arg0: i32, %arg1: i32, %arg2: i32) -> (i32, i32) {
    %c0_i32 = arith.constant 0 : i32
    %c0_i32_0 = arith.constant 0 : i32
    %c0_i32_1 = arith.constant 0 : i32
    return %c0_i32, %c0_i32_0 : i32, i32
  }
  func.func @transform_5(%arg0: i32, %arg1: i32, %arg2: i32) -> (i32, i32, i32) {
    %c2_i32 = arith.constant 2 : i32
    %0 = arith.muli %arg0, %c2_i32 : i32
    %1 = arith.addi %0, %arg1 : i32
    %c0_i32 = arith.constant 0 : i32
    %c0_i32_0 = arith.constant 0 : i32
    %c0_i32_1 = arith.constant 0 : i32
    return %1, %c0_i32, %c0_i32_0 : i32, i32, i32
  }
}

</mosaic_0001>

<bundles_post_ra>
// kernel: tpu_custom_call.1
= control target key start
LH: loop header
LB: loop body
LE: loop exit
PB: predicated region body
PF: predicated region fallthrough
CT: control target
= control target key end

     0   :  { %s4482_s0 = inlined_call_operand.hbm [shape: bf16[2,512,768], index: 0, kind: input, shape index: {}]   ;;  %s4483_s1 = inlined_call_operand.vmem [shape: bf16[768,8], index: 1, kind: input, shape index: {}]   ;;  %s4484_s2 = inlined_call_operand.hbm [shape: f32[1,8], index: 2, kind: input, shape index: {}]   ;;  %s4485_s3 = inlined_call_operand.hbm [shape: f32[8,32], index: 3, kind: input, shape index: {}]   ;;  %s4486_s4 = inlined_call_operand.hbm [shape: f32[1,32], index: 4, kind: input, shape index: {}]   ;;  %s4487_s5 = inlined_call_operand.hbm [shape: f32[4,1,32], index: 5, kind: output, shape index: {}]  }
   0x1   :  { %4501 = sst [smem:[#allocation21_spill]] %s4484_s2 }
   0x2   :  { %4502 = sst [smem:[#allocation22_spill]] %s4485_s3 }
   0x3   :  { %4503 = sst [smem:[#allocation23_spill]] %s4486_s4 }
   0x4   :  { %4504 = sst [smem:[#allocation24_spill]] %s4487_s5 }
   0x5   :  { %10 = vsyncpa [#allocation4], 0 }
   0x6   :  { %12 = vsyncpa [#allocation4 + $0x1], 0 }
   0x7   :  { %13 = vsyncpa [#allocation7], 0 }
   0x8   :  { %14 = vsyncpa [#allocation10], 0 }
   0x9   :  { %15 = vsyncpa [#allocation5], 0 }
   0xa   :  { %17 = vsyncpa [#allocation5 + $0x1], 0  ;;  %s3625_s18 = smov 0   ;;  %s3627_s19 = smov 0  }
   0xb   :  { %s3629_s20 = smov 0   ;;  %s3631_s21 = smov 0  }
   0xc   :  { %s3633_s22 = smov 0   ;;  %s3635_s23 = smov 0  }
   0xd   :  { %s3637_s24 = smov 0   ;;  %s3639_s25 = smov 0  }
   0xe   :  { %s3641_s26 = smov 0   ;;  %s3643_s27 = smov 0  }
   0xf   :  { %s3645_s28 = smov 0  }
  0x10 LB: > { %4505 = sst [smem:[#allocation16_spill]] %s3545_s18  ;;  %s2376_s29 = sadd.s32 4294967295, %s3585_s28   ;;  %s3585_s28 = sphi %s3645_s28, %s23_s28   ;;  %s3581_s27 = sphi %s3643_s27, %s4543_s27   ;;  %s3577_s26 = sphi %s3641_s26, %s4542_s26   ;;  %s3573_s25 = sphi %s3639_s25, %s4541_s25   ;;  %s3569_s24 = sphi %s3637_s24, %s4540_s24   ;;  %s3565_s23 = sphi %s3635_s23, %s4539_s23   ;;  %s3561_s22 = sphi %s3633_s22, %s4538_s22   ;;  %s3557_s21 = sphi %s3631_s21, %s4537_s21   ;;  %s3553_s20 = sphi %s3629_s20, %s4536_s20   ;;  %s3549_s19 = sphi %s3627_s19, %s4535_s19   ;;  %s3545_s18 = sphi %s3625_s18, %s4534_s18  }
  0x11   : > { %4506 = sst [smem:[#allocation17_spill]] %s3585_s28  ;;  %s2377_s30 = sadd.s32 4294967294, %s3585_s28  }
  0x12   : > { %p66_p0 = scmp.ne.s32.totalorder %s3561_s22, %s3557_s21  ;;  %p3681_p1 = scmp.eq.s32.totalorder %s2376_s29, 0 }
  0x13   : > { %p177_p2 = scmp.ne.s32.totalorder %s3553_s20, %s3549_s19  ;;  %p178_p4 = scmp.eq.s32.totalorder %s2376_s29, 3 }
  0x14   : > { %s4507_s6 = scalar_select %p3681_p1, 1, 0 }
  0x15   : > { %p3690_p3 = por %p3681_p1, %p66_p0  ;;  %p183_p5 = scmp.ne.s32.totalorder %s3549_s19, %s3545_s18 }
  0x16   : > { %p184_p6 = scmp.eq.s32.totalorder %s2377_s30, 3  ;;  %p3696_p7 = por %p178_p4, %p177_p2 }
  0x17   : > { %s4508_s8 = scalar_select %p3690_p3, 1, 0 }
  0x18   : > { %s4509_s9 = scalar_select %p3696_p7, 1, 0 }
  0x19   : > { %p2380_p8 = scmp.ge.s32.totalorder %s3585_s28, 1  ;;  %p3701_p9 = por %p184_p6, %p183_p5 }
  0x1a   : > { %4510 = sst [smem:[#allocation18_spill]] %s4509_s9  ;;  %p191_p10 = scmp.lt.s32.totalorder %s3585_s28, 5 }
  0x1b   : > { %s4511_s10 = scalar_select %p3701_p9, 1, 0 }
  0x1c   : > { %p3706_p11 = pnand %p2380_p8, %p191_p10  ;;  %s3587_s12 = smov [#allocation6]  }
  0x1d   : > { %4512 = sst [smem:[#allocation19_spill]] %s4511_s10  ;;  %s207_s13 = sshll.u32 %s3587_s12, 4  ;;  %s208_s13 = int_to_ptr.vmem [resolvable:$true] %s207_s13 }
  0x1e   : > { %s4513_s11 = scalar_select %p3706_p11, 1, 0 }
  0x1f   : > { %p3029_p12 = pneg %p3706_p11  ;;  %s3588_s14 = smov [#allocation8]  }
  0x20   : > { %s218_s15 = sshll.u32 %s3588_s14, 4  ;;  %s3589_s17 = smov [#allocation9]   ;;  %s3718_s15 = int_to_ptr.vmem [resolvable:$true] %s218_s15 }
  0x21   : > { %p3714_p13 = pnand %p3029_p12, %p3681_p1  ;;  %s229_s21 = sshll.u32 %s3589_s17, 4  ;;  %s3720_s21 = int_to_ptr.vmem [resolvable:$true] %s229_s21 }
  0x22   : > { %s4515_s2 = sld [smem:[#allocation21_spill]] }
  0x23   : > { %p3730_p2 = pneg %p3714_p13 }
  0x28   : > { %s3341_s12 = scalar_lea.hbm %s4515_s2, 16 }
  0x29   : > { %p3342_p0 = scmp.ne.s32.totalorder %s4515_s2, %s3341_s12  ;;  %p3348_p6 = scmp.lt.u32.totalorder %s3341_s12, %s4515_s2 }
  0x2b   : > { %p3344_p4 = pnand %p3730_p2, %p3342_p0 }
  0x2d   : > { %p3345_p5 = pneg %p3344_p4 }
  0x2f   : > { %p3350_p8 = pnand %p3348_p6, %p3345_p5 }
  0x31   : > { %3353 = shalt.err (!%p3350_p8)
}
  0x32   : > { %s3354_s29 = scalar_lea.vmem %s208_s13, 16  ;;  %s3361_s7 = scalar_lea.vmem %s208_s13, 32 }
  0x33   : > { %p3355_p10 = scmp.ne.s32.totalorder %s208_s13, %s3354_s29  ;;  %p3362_p7 = scmp.lt.s32.totalorder %s208_s13, %s208_s13 }
  0x34   : > { %p3363_p1 = scmp.lt.s32.totalorder %s3361_s7, %s3354_s29 }
  0x35   : > { %p3357_p12 = pnand %p3355_p10, %p3730_p2 }
  0x36   : > { %p3364_p3 = por %p3363_p1, %p3362_p7 }
  0x37   : > { %p3358_p9 = pneg %p3357_p12 }
  0x39   : > { %p3365_p11 = pnand %p3364_p3, %p3358_p9 }
  0x3b   : > { %3368 = shalt.err (!%p3365_p11)
}
  0x3c   : > { %3032 = dma.hbm_to_vmem [thread:$0]  (!%p3714_p13), %s4515_s2, 16, %s208_s13, [#allocation7]  }
  0x3d   : > { %s4517_s3 = sld [smem:[#allocation22_spill]] }
  0x43   : > { %s3369_s17 = scalar_lea.hbm %s4517_s3, 128 }
  0x44   : > { %p3370_p0 = scmp.ne.s32.totalorder %s4517_s3, %s3369_s17  ;;  %p3376_p3 = scmp.lt.u32.totalorder %s3369_s17, %s4517_s3 }
  0x46   : > { %p3372_p4 = pnand %p3370_p0, %p3730_p2 }
  0x48   : > { %p3373_p1 = pneg %p3372_p4 }
  0x4a   : > { %p3378_p7 = pnand %p3376_p3, %p3373_p1 }
  0x4c   : > { %3381 = shalt.err (!%p3378_p7)
}
  0x4d   : > { %s3382_s13 = scalar_lea.vmem %s3718_s15, 128  ;;  %p3390_p6 = scmp.lt.s32.totalorder %s3718_s15, %s3718_s15 }
  0x4e   : > { %p3383_p9 = scmp.ne.s32.totalorder %s3718_s15, %s3382_s13  ;;  %p3391_p8 = scmp.lt.s32.totalorder %s3382_s13, %s3382_s13 }
  0x50   : > { %p3385_p11 = pnand %p3383_p9, %p3730_p2  ;;  %p3392_p10 = por %p3391_p8, %p3390_p6 }
  0x52   : > { %p3386_p5 = pneg %p3385_p11 }
  0x54   : > { %p3393_p12 = pnand %p3392_p10, %p3386_p5 }
  0x56   : > { %3396 = shalt.err (!%p3393_p12)
}
  0x57   : > { %3035 = dma.hbm_to_vmem [thread:$0]  (!%p3714_p13), %s4517_s3, 128, %s3718_s15, [#allocation7]  }
  0x58   : > { %s4518_s4 = sld [smem:[#allocation23_spill]] }
  0x5e   : > { %s3397_s18 = scalar_lea.hbm %s4518_s4, 16 }
  0x5f   : > { %p3398_p0 = scmp.ne.s32.totalorder %s4518_s4, %s3397_s18  ;;  %p3404_p3 = scmp.lt.u32.totalorder %s3397_s18, %s4518_s4 }
  0x61   : > { %p3400_p4 = pnand %p3398_p0, %p3730_p2 }
  0x63   : > { %p3401_p1 = pneg %p3400_p4 }
  0x65   : > { %p3406_p7 = pnand %p3404_p3, %p3401_p1 }
  0x67   : > { %3409 = shalt.err (!%p3406_p7)
}
  0x68   : > { %s3410_s15 = scalar_lea.vmem %s3720_s21, 16  ;;  %s3417_s13 = scalar_lea.vmem %s3720_s21, 32 }
  0x69   : > { %p3411_p9 = scmp.ne.s32.totalorder %s3720_s21, %s3410_s15  ;;  %p3418_p6 = scmp.lt.s32.totalorder %s3720_s21, %s3720_s21 }
  0x6a   : > { %p3419_p8 = scmp.lt.s32.totalorder %s3417_s13, %s3410_s15 }
  0x6b   : > { %p3413_p11 = pnand %p3411_p9, %p3730_p2 }
  0x6c   : > { %p3420_p10 = por %p3419_p8, %p3418_p6 }
  0x6d   : > { %p3414_p5 = pneg %p3413_p11 }
  0x6f   : > { %p3421_p12 = pnand %p3420_p10, %p3414_p5 }
  0x71   : > { %3424 = shalt.err (!%p3421_p12)
}
  0x72   : > { %3038 = dma.hbm_to_vmem [thread:$0]  (!%p3714_p13), %s4518_s4, 16, %s3720_s21, [#allocation10]  }
  0x73   : > { %s38_s14 = sadd.s32 1, %s3577_s26  ;;  %s42_s16 = sadd.s32 1, %s3581_s27 }
  0x74   : > { %p40_p2 = scmp.ge.s32.totalorder %s38_s14, 2  ;;  %s53_s10 = sadd.s32 1, %s3565_s23 }
  0x75   : > { %p60_p0 = scmp.ne.s32.totalorder %s3565_s23, %s3561_s22  ;;  %p61_p4 = scmp.eq.s32.totalorder %s3585_s28, 0 }
  0x76   : > { %s4545_s14 = smov (%p40_p2, %s38_s14), 0  ;;  %s4547_s16 = smov (!%p40_p2, %s42_s16), %s3581_s27 }
  0x77   : > { %s49_s30 = ssub.s32 %s3577_s26, %s4545_s14  ;;  %p44_p1 = scmp.ge.s32.totalorder %s4547_s16, 2 }
  0x78   : > { %s2378_s18 = sshll.u32 %s3581_s27, 1  ;;  %p3805_p13 = por %p61_p4, %p60_p0 }
  0x79   : > { %s161_s12 = sadd.s32 %s3577_s26, %s2378_s18  ;;  %s4549_s16 = smov (%p44_p1, %s4547_s16), 0 }
  0x7a   : > { %4520 = sst [smem:[#allocation20_spill]] %s4549_s16  ;;  %p3050_p3 = scmp.lt.s32.totalorder %s3585_s28, 4 }
  0x7b   : > { %s240_s17 = sand.u32 1, %s3565_s23   ;;  %s48_s29 = ssub.s32 %s3581_s27, %s4549_s16 }
  0x7c   : > { %s2379_s7 = sshll.u32 %s4549_s16, 1  ;;  %s50_s15 = sor.u32 %s49_s30, %s48_s29 }
  0x7d   : > { %s163_s13 = sadd.s32 %s2379_s7, %s4545_s14  ;;  %p51_p7 = scmp.eq.s32.totalorder %s50_s15, 0 }
  0x7e   : > { %s164_s5 = ssub.s32 %s161_s12, %s163_s13  ;;  %s4521_s2 = sadd.s32 1, %s3553_s20 }
  0x7f   : > { %p165_p9 = scmp.eq.s32.totalorder %s164_s5, 0  ;;  %s3009_s18 = smul.u32 768, %s240_s17 }
  0x80   : > { %s3819_s9 = scalar_select %p51_p7, %s3565_s23, %s53_s10  }
  0x81   : > { %s3824_s3 = scalar_select %p165_p9, %s3553_s20, %s4521_s2  }
  0x82   : > { %p3828_p11 = pnand %p3050_p3, %p3805_p13  ;;  %s3010_s28 = smul.u32 192, %s3577_s26 }
  0x83   : > { %s3011_s16 = smul.u32 384, %s3581_s27  ;;  %s244_s30 = scalar_lea.vmem [#allocation3], %s3009_s18 }
  0x84   : > { %s255_s29 = sshll.u32 %s244_s30, 4  ;;  %s3841_s21 = scalar_lea.sflag [#allocation4], %s240_s17  ;;  %s3834_s29 = int_to_ptr.vmem [resolvable:$true] %s255_s29 }
  0x85   : > { %s252_s7 = sadd.s32 %s3011_s16, %s3010_s28  ;;  %p3427_p6 = pneg %p3828_p11 }
  0x86   : > { %s2387_s10 = sshll.u32 %s252_s7, 6  ;;  %s3430_s5 = scalar_lea.hbm %s4482_s0, 49152 }
  0x87   : > { %s3839_s2 = scalar_lea.hbm %s4482_s0, %s2387_s10 }
  0x88   : > { %s3425_s13 = scalar_lea.hbm %s3839_s2, 12288  ;;  %p3431_p12 = scmp.lt.u32.totalorder %s3839_s2, %s4482_s0 }
  0x89   : > { %p3426_p5 = scmp.ne.s32.totalorder %s3839_s2, %s3425_s13  ;;  %p3432_p2 = scmp.lt.u32.totalorder %s3430_s5, %s3425_s13 }
  0x8a   : > { %p3434_p4 = scmp.lt.u32.totalorder %s3425_s13, %s3839_s2 }
  0x8b   : > { %p3428_p8 = pnand %p3427_p6, %p3426_p5  ;;  %p3433_p0 = por %p3432_p2, %p3431_p12 }
  0x8d   : > { %p3429_p10 = pneg %p3428_p8  ;;  %p3435_p1 = por %p3434_p4, %p3433_p0 }
  0x8f   : > { %p3436_p13 = pnand %p3435_p1, %p3429_p10 }
  0x91   : > { %3439 = shalt.err (!%p3436_p13)
}
  0x92   : > { %s3440_s17 = scalar_lea.vmem %s3834_s29, 12288  ;;  %s3590_s7 = smov [#allocation3]  }
  0x93   : > { %p3441_p3 = scmp.ne.s32.totalorder %s3834_s29, %s3440_s17  ;;  %s3445_s10 = sshll.u32 %s3590_s7, 4  ;;  %s3446_s10 = int_to_ptr.vmem [resolvable:$false] %s3445_s10 }
  0x94   : > { %s3447_s12 = scalar_lea.vmem %s3446_s10, 24576  ;;  %p3448_p5 = scmp.lt.s32.totalorder %s3834_s29, %s3446_s10 }
  0x95   : > { %p3443_p7 = pnand %p3441_p3, %p3427_p6  ;;  %p3449_p8 = scmp.lt.s32.totalorder %s3447_s12, %s3440_s17 }
  0x97   : > { %p3444_p9 = pneg %p3443_p7  ;;  %p3450_p12 = por %p3449_p8, %p3448_p5 }
  0x99   : > { %p3451_p2 = pnand %p3450_p12, %p3444_p9 }
  0x9b   : > { %3454 = shalt.err (!%p3451_p2)
}
  0x9c   : > { %s3591_s15 = smov 384   ;;  %s3592_s13 = smov 24  }
  0x9d   : > { %3042 = dma.hbm_to_vmem [thread:$0]  (!%p3828_p11), %s3839_s2, 12288, %s3834_s29, %s3841_s21, %s3591_s15, %s3591_s15, %s3592_s13  }
  0x9e   : > { %p4523_p6 = scmp.ne.s32.totalorder %s4513_s11, 0 }
  0x9f   : > { %s269_s28 = sand.u32 (!%p4523_p6), 1, %s3561_s22   ;;  %p4524_p10 = scmp.ne.s32.totalorder (!%p4523_p6), %s4508_s8, 0 }
  0xa0   : > { %267 = sbr.rel (%p4523_p6) target bundleno = 903 (0x387), region = 40  ;;  %s270_s5 = scalar_lea.sflag (!%p4523_p6), [#allocation4], %s269_s28 }
  0xa1   : > { %s3012_s16 = smul.u32 (!%p4523_p6), 768, %s269_s28 }
  0xa3   : > { %s3872_s18 = scalar_lea.vmem (!%p4523_p6), [#allocation3], %s3012_s16 }
  0xa7   : > { %3528 = dma.done.wait (%p4524_p10), %s270_s5, 12288  }
  0xa8   : > { %3530 = vsyncadd (%p4524_p10), %s270_s5, 4294955008  ;;  %p4525_p0 = scmp.ne.s32.totalorder %s4507_s6, 0 }
  0xaa   : > { %3532 = dma.done.wait (%p4525_p0), [#allocation7], 144  }
  0xab   : > { %3534 = vsyncadd (%p4525_p0), [#allocation7], 4294967152 }
  0xac   : > { %3536 = dma.done.wait (%p4525_p0), [#allocation10], 16  }
  0xad   : > { %3538 = vsyncadd (%p4525_p0), [#allocation10], 4294967280  ;;  %v3149_v0 = vld [vmem:[%s4483_s1 + $0x40] sm:$0xff]   ;;  %v3151_v2 = vld [vmem:[%s4483_s1 + $0x48] sm:$0xff]   ;;  %vm1812_vm0 = vcmask 64512   ;;  %vm2166_vm1 = vcmask 261120  }
  0xae   : > { %v3150_v1 = vld [vmem:[%s4483_s1] sm:$0xff]   ;;  %2574 = vmatprep.subr.bf16.mxu0 %v3149_v0  ;;  %2993 = vmatprep.subr.bf16.mxu1 %v3149_v0  ;;  %v3152_v3 = vld [vmem:[%s4483_s1 + $0x8] sm:$0xff]   ;;  %v3153_v4 = vld [vmem:[%s4483_s1 + $0x50] sm:$0xff]   ;;  %vm320_vm2 = vcmask 253952   ;;  %s309_s12 = sand.u32 1, %s3549_s19   ;;  %s2570_s15 = sshll.u32 %s3573_s25, 1 }
  0xaf   : > { %2575 = vmatpush3.bf16.msra.mxu0 %v3150_v1  ;;  %3001 = vmatpush3.bf16.msra.mxu1 %v3150_v1  ;;  %v3154_v5 = vld [vmem:[%s4483_s1 + $0x10] sm:$0xff]   ;;  %v3155_v6 = vld [vmem:[%s4483_s1 + $0x58] sm:$0xff]   ;;  %v3157_v8 = vld [vmem:[%s4483_s1 + $0x60] sm:$0xff]   ;;  %s2254_s13 = sadd.s32 %s3569_s24, %s2570_s15  ;;  %s310_s16 = scalar_lea.vmem [#allocation11], %s309_s12 }
  0xb0   : > { %2576 = vmatprep.subr.bf16.mxu0 %v3151_v2  ;;  %2994 = vmatprep.subr.bf16.mxu1 %v3151_v2  ;;  %v3156_v7 = vld [vmem:[%s4483_s1 + $0x18] sm:$0xff]   ;;  %v3158_v9 = vld [vmem:[%s4483_s1 + $0x20] sm:$0xff]   ;;  %v3159_v10 = vld [vmem:[%s4483_s1 + $0x68] sm:$0xff]   ;;  %s2571_s28 = sshll.u32 %s2254_s13, 4  ;;  %s2261_s5 = sshll.u32 %s310_s16, 4  ;;  %s4421_s5 = int_to_ptr.vmem [resolvable:$true] %s2261_s5 }
  0xb1   : > { %v3167_v11 = vld [vmem:[%s3872_s18 + $0x4] ss:$24 sps:$4 sm:$0xff]   ;;  %v3161_v14 = vld [vmem:[%s4483_s1 + $0x70] sm:$0xff]   ;;  %v3165_v19 = vld [vmem:[%s3872_s18] ss:$24 sps:$4 sm:$0xff]   ;;  %s4527_s29 = sld [smem:[#allocation24_spill]] }
  0xb2   : > { %v3170_v12 = vld [vmem:[%s3872_s18 + $0x244] ss:$24 sps:$4 sm:$0xff]   ;;  %1321 = vmatprep.mubr.bf16.mxu0 %v3167_v11  ;;  %v3162_v15 = vld [vmem:[%s4483_s1 + $0x30] sm:$0xff]   ;;  %v3168_v20 = vld [vmem:[%s3872_s18 + $0x240] ss:$24 sps:$4 sm:$0xff]   ;;  %s2247_s25 = scalar_lea.sflag [#allocation5], %s309_s12 }
  0xb3   : > { %2577 = vmatpush3.bf16.msra.mxu0 %v3152_v3  ;;  %3002 = vmatpush3.bf16.msra.mxu1 %v3152_v3  ;;  %v3160_v13 = vld [vmem:[%s4483_s1 + $0x28] sm:$0xff]   ;;  %v3163_v16 = vld [vmem:[%s4483_s1 + $0x78] sm:$0xff]   ;;  %v3171_v18 = vld [vmem:[%s4483_s1 + $0xc0] sm:$0xff]   ;;  %s3455_s8 = scalar_lea.vmem %s4421_s5, 16  ;;  %s3594_s24 = smov [#allocation11]  }
  0xb4   : > { %2578 = vmatprep.subr.bf16.mxu0 %v3153_v4  ;;  %2995 = vmatprep.subr.bf16.mxu1 %v3153_v4  ;;  %v3164_v17 = vld [vmem:[%s4483_s1 + $0x38] sm:$0xff]   ;;  %v3172_v21 = vld [vmem:[%s4483_s1 + $0x140] sm:$0xff]   ;;  %v3175_v24 = vld [vmem:[%s4483_s1 + $0xc8] sm:$0xff]   ;;  %p3456_p11 = scmp.ne.s32.totalorder %s4421_s5, %s3455_s8  ;;  %s3459_s21 = sshll.u32 %s3594_s24, 4  ;;  %s3460_s21 = int_to_ptr.vmem [resolvable:$false] %s3459_s21 }
  0xb5   : > { %1417 = vmatprep.mubr.bf16.mxu1 %v3170_v12  ;;  %v3173_v22 = vld [vmem:[%s4483_s1 + $0x80] sm:$0xff]   ;;  %v3177_v25 = vld [vmem:[%s3872_s18 + $0x34] ss:$24 sps:$4 sm:$0xff]   ;;  %v3181_v30 = vld [vmem:[%s3872_s18 + $0x30] ss:$24 sps:$4 sm:$0xff]   ;;  %s3461_s30 = scalar_lea.vmem %s3460_s21, 32  ;;  %p3462_p3 = scmp.lt.s32.totalorder %s4421_s5, %s3460_s21 }
  0xb6   : > { %v3174_v23 = vld [vmem:[%s4483_s1 + $0x100] sm:$0xff]   ;;  %v3179_v26 = vld [vmem:[%s3872_s18 + $0x274] ss:$24 sps:$4 sm:$0xff]   ;;  %v3182_v31 = vld [vmem:[%s3872_s18 + $0x270] ss:$24 sps:$4 sm:$0xff]   ;;  %p3463_p7 = scmp.lt.s32.totalorder %s3461_s30, %s3455_s8 }
  0xb7   : > { %2579 = vmatpush3.bf16.msra.mxu0 %v3154_v5  ;;  %3003 = vmatpush3.bf16.msra.mxu1 %v3154_v5  ;;  %v3186_v27 = vld [vmem:[%s4483_s1 + $0x148] sm:$0xff]   ;;  %v3183_v32 = vld [vmem:[%s4483_s1 + $0xd0] sm:$0xff]   ;;  %v3185_v34 = vld [vmem:[%s4483_s1 + $0xd8] sm:$0xff]   ;;  %s4419_s2 = scalar_lea.hbm %s4527_s29, %s2571_s28 }
  0xb8   : > { %2580 = vmatprep.subr.bf16.mxu0 %v3155_v6  ;;  %2996 = vmatprep.subr.bf16.mxu1 %v3155_v6  ;;  %v3176_v28 = vld [vmem:[%s4483_s1 + $0x88] sm:$0xff]   ;;  %v3184_v33 = vld [vmem:[%s4483_s1 + $0x90] sm:$0xff]   ;;  %v3187_v37 = vld [vmem:[%s4483_s1 + $0x98] sm:$0xff]   ;;  %p3464_p9 = por %p3463_p7, %p3462_p3 }
  0xb9   : > { %v3188_v29 = vld [vmem:[%s4483_s1 + $0x108] sm:$0xff]   ;;  %v3195_v38 = vld [vmem:[%s4483_s1 + $0xe0] sm:$0xff]   ;;  %v3206_v41 = vld [vmem:[%s4483_s1 + $0x150] sm:$0xff]  }
  0xba   : > { %v3189_v35 = vld [vmem:[%s3872_s18 + $0x64] ss:$24 sps:$4 sm:$0xff]   ;;  %v3193_v39 = vld [vmem:[%s3872_s18 + $0x60] ss:$24 sps:$4 sm:$0xff]   ;;  %v3208_v44 = vld [vmem:[%s4483_s1 + $0x110] sm:$0xff]  }
  0xbb   : > { %2581 = vmatpush3.bf16.msra.mxu0 %v3156_v7  ;;  %3004 = vmatpush3.bf16.msra.mxu1 %v3156_v7  ;;  %v3191_v36 = vld [vmem:[%s3872_s18 + $0x2a4] ss:$24 sps:$4 sm:$0xff]   ;;  %v3194_v40 = vld [vmem:[%s3872_s18 + $0x2a0] ss:$24 sps:$4 sm:$0xff]   ;;  %v3199_v45 = vld [vmem:[%s3872_s18 + $0x94] ss:$24 sps:$4 sm:$0xff]  }
  0xbc   : > { %2582 = vmatprep.subr.bf16.mxu0 %v3157_v8  ;;  %2997 = vmatprep.subr.bf16.mxu1 %v3157_v8  ;;  %v3196_v42 = vld [vmem:[%s4483_s1 + $0xa0] sm:$0xff]   ;;  %v3197_v43 = vld [vmem:[%s4483_s1 + $0xe8] sm:$0xff]   ;;  %v3205_v48 = vld [vmem:[%s4483_s1 + $0xf0] sm:$0xff]  }
  0xbd   : > { %v3201_v46 = vld [vmem:[%s3872_s18 + $0x2d4] ss:$24 sps:$4 sm:$0xff]   ;;  %v3203_v49 = vld [vmem:[%s3872_s18 + $0x90] ss:$24 sps:$4 sm:$0xff]   ;;  %v3211_v55 = vld [vmem:[%s3872_s18 + $0xc4] ss:$24 sps:$4 sm:$0xff]  }
  0xbe   : > { %v3198_v47 = vld [vmem:[%s4483_s1 + $0xa8] sm:$0xff]   ;;  %v3217_v50 = vld [vmem:[%s4483_s1 + $0x158] sm:$0xff]   ;;  %v3207_v53 = vld [vmem:[%s4483_s1 + $0xb0] sm:$0xff]  }
  0xbf   : > { %2583 = vmatpush3.bf16.msra.mxu0 %v3158_v9  ;;  %3005 = vmatpush3.bf16.msra.mxu1 %v3158_v9  ;;  %v3218_v51 = vld [vmem:[%s4483_s1 + $0x118] sm:$0xff]   ;;  %v3204_v52 = vld [vmem:[%s3872_s18 + $0x2d0] ss:$24 sps:$4 sm:$0xff]   ;;  %v3215_v56 = vld [vmem:[%s3872_s18 + $0xc] ss:$24 sps:$4 sm:$0xff]  }
  0xc0   : > { %2584 = vmatprep.subr.bf16.mxu0 %v3159_v10  ;;  %2998 = vmatprep.subr.bf16.mxu1 %v3159_v10  ;;  %v3209_v54 = vld [vmem:[%s4483_s1 + $0xf8] sm:$0xff]   ;;  %v3231_v58 = vld [vmem:[%s4483_s1 + $0x160] sm:$0xff]   ;;  %v3239_v0 = vld [vmem:[%s4483_s1 + $0x168] sm:$0xff]  }
  0xc1   : > { %v3210_v57 = vld [vmem:[%s4483_s1 + $0xb8] sm:$0xff]   ;;  %v3232_v59 = vld [vmem:[%s4483_s1 + $0x120] sm:$0xff]   ;;  %v3240_v1 = vld [vmem:[%s4483_s1 + $0x128] sm:$0xff]  }
  0xc2   : > { %v3213_v60 = vld [vmem:[%s3872_s18 + $0x8] ss:$24 sps:$4 sm:$0xff]   ;;  %v3219_v62 = vld [vmem:[%s3872_s18 + $0xf4] ss:$24 sps:$4 sm:$0xff]   ;;  %v3224_v3 = vld [vmem:[%s3872_s18 + $0x38] ss:$24 sps:$4 sm:$0xff]  }
  0xc3   : > { %2585 = vmatpush3.bf16.msra.mxu0 %v3160_v13  ;;  %3006 = vmatpush3.bf16.msra.mxu1 %v3160_v13  ;;  %v3216_v61 = vld [vmem:[%s3872_s18 + $0xc0] ss:$24 sps:$4 sm:$0xff]   ;;  %v3221_v63 = vld [vmem:[%s3872_s18 + $0x3c] ss:$24 sps:$4 sm:$0xff]   ;;  %v3223_v2 = vld [vmem:[%s3872_s18 + $0xf0] ss:$24 sps:$4 sm:$0xff]  }
  0xc4   : > { %2586 = vmatprep.subr.bf16.mxu0 %v3161_v14  ;;  %2999 = vmatprep.subr.bf16.mxu1 %v3161_v14  ;;  %v3225_v4 = vld [vmem:[%s3872_s18 + $0x124] ss:$24 sps:$4 sm:$0xff]   ;;  %v3253_v6 = vld [vmem:[%s4483_s1 + $0x170] sm:$0xff]   ;;  %v3229_v8 = vld [vmem:[%s3872_s18 + $0x120] ss:$24 sps:$4 sm:$0xff]  }
  0xc5   : > { %v3227_v5 = vld [vmem:[%s3872_s18 + $0x6c] ss:$24 sps:$4 sm:$0xff]   ;;  %v3261_v9 = vld [vmem:[%s4483_s1 + $0x178] sm:$0xff]   ;;  %v3230_v11 = vld [vmem:[%s3872_s18 + $0x68] ss:$24 sps:$4 sm:$0xff]  }
  0xc6   : > { %v3254_v7 = vld [vmem:[%s4483_s1 + $0x130] sm:$0xff]   ;;  %v3262_v10 = vld [vmem:[%s4483_s1 + $0x138] sm:$0xff]  }
  0xc7   : > { %2587 = vmatpush3.bf16.msra.mxu0 %v3162_v15  ;;  %3007 = vmatpush3.bf16.msra.mxu1 %v3162_v15  ;;  %v3233_v12 = vld [vmem:[%s3872_s18 + $0x154] ss:$24 sps:$4 sm:$0xff]   ;;  %v3237_v14 = vld [vmem:[%s3872_s18 + $0x150] ss:$24 sps:$4 sm:$0xff]  }
  0xc8   : > { %2588 = vmatprep.subr.bf16.mxu0 %v3163_v16  ;;  %3000 = vmatprep.subr.bf16.mxu1 %v3163_v16  ;;  %v3235_v13 = vld [vmem:[%s3872_s18 + $0x9c] ss:$24 sps:$4 sm:$0xff]   ;;  %v3238_v15 = vld [vmem:[%s3872_s18 + $0x98] ss:$24 sps:$4 sm:$0xff]  }
  0xc9   : > { %v3241_v16 = vld [vmem:[%s3872_s18 + $0x184] ss:$24 sps:$4 sm:$0xff]  }
  0xcb   : > { %2589 = vmatpush3.bf16.msra.mxu0 %v3164_v17  ;;  %3008 = vmatpush3.bf16.msra.mxu1 %v3164_v17  ;;  %v3243_v17 = vld [vmem:[%s3872_s18 + $0xcc] ss:$24 sps:$4 sm:$0xff]  }
  0xcc   : > { %2686 = vmatprep.subr.bf16.mxu1 %v3171_v18  ;;  %2798 = vmatprep.subr.bf16.mxu0 %v3172_v21  ;;  %v3245_v18 = vld [vmem:[%s3872_s18 + $0x180] ss:$24 sps:$4 sm:$0xff]   ;;  %v3249_v21 = vld [vmem:[%s3872_s18 + $0xfc] ss:$24 sps:$4 sm:$0xff]  }
  0xce   : > { %1322 = vmatmul.mubr.bf16.vlgmr.msra.gmra.mrb[0].mxu0 %v3165_v19  ;;  %1418 = vmatmul.mubr.bf16.vlgmr.msra.gmra.mrb[0].mxu1 %v3168_v20  ;;  %v3246_v19 = vld [vmem:[%s3872_s18 + $0xc8] ss:$24 sps:$4 sm:$0xff]   ;;  %v3247_v20 = vld [vmem:[%s3872_s18 + $0x1b4] ss:$24 sps:$4 sm:$0xff]  }
  0xcf   : > { %2687 = vmatpush3.bf16.msra.mxu1 %v3173_v22  ;;  %2799 = vmatpush3.bf16.msra.mxu0 %v3174_v23  ;;  %v3251_v22 = vld [vmem:[%s3872_s18 + $0x1b0] ss:$24 sps:$4 sm:$0xff]  }
  0xd0   : > { %2688 = vmatprep.subr.bf16.mxu1 %v3175_v24  ;;  %1329 = vmatprep.mubr.bf16.mxu0 %v3177_v25  ;;  %v3252_v23 = vld [vmem:[%s3872_s18 + $0xf8] ss:$24 sps:$4 sm:$0xff]   ;;  %v3255_v24 = vld [vmem:[%s3872_s18 + $0x1e4] ss:$24 sps:$4 sm:$0xff]  }
  0xd1   : > { %1425 = vmatprep.mubr.bf16.mxu1 %v3179_v26  ;;  %2800 = vmatprep.subr.bf16.mxu0 %v3186_v27  ;;  %v3257_v25 = vld [vmem:[%s3872_s18 + $0x12c] ss:$24 sps:$4 sm:$0xff]   ;;  %v3259_v26 = vld [vmem:[%s3872_s18 + $0x1e0] ss:$24 sps:$4 sm:$0xff]  }
  0xd2   : > { %v3260_v27 = vld [vmem:[%s3872_s18 + $0x128] ss:$24 sps:$4 sm:$0xff]  }
  0xd3   : > { %2689 = vmatpush3.bf16.msra.mxu1 %v3176_v28  ;;  %2801 = vmatpush3.bf16.msra.mxu0 %v3188_v29  ;;  %v3263_v28 = vld [vmem:[%s3872_s18 + $0x214] ss:$24 sps:$4 sm:$0xff]  }
  0xd4   : > { %2690 = vmatprep.subr.bf16.mxu1 %v3183_v32  ;;  %2802 = vmatprep.subr.bf16.mxu0 %v3206_v41  ;;  %v3265_v29 = vld [vmem:[%s3872_s18 + $0x15c] ss:$24 sps:$4 sm:$0xff]   ;;  %v3269_v32 = vld [vmem:[%s3872_s18 + $0x18c] ss:$24 sps:$4 sm:$0xff]  }
  0xd5   : > { %v3283_v41 = vld [vmem:[%s3872_s18 + $0x74] ss:$24 sps:$4 sm:$0xff]  }
  0xd6   : > { %1330 = vmatmul.mubr.bf16.gmra.mrb[4].mxu0 %v3181_v30  ;;  %1426 = vmatmul.mubr.bf16.gmra.mrb[4].mxu1 %v3182_v31  ;;  %v3267_v30 = vld [vmem:[%s3872_s18 + $0x210] ss:$24 sps:$4 sm:$0xff]  }
  0xd7   : > { %2691 = vmatpush3.bf16.msra.mxu1 %v3184_v33  ;;  %1337 = vmatprep.mubr.bf16.mxu0 %v3189_v35  ;;  %v3268_v31 = vld [vmem:[%s3872_s18 + $0x158] ss:$24 sps:$4 sm:$0xff]   ;;  %v3273_v33 = vld [vmem:[%s3872_s18 + $0x14] ss:$24 sps:$4 sm:$0xff]   ;;  %v3274_v35 = vld [vmem:[%s3872_s18 + $0x188] ss:$24 sps:$4 sm:$0xff]  }
  0xd8   : > { %2692 = vmatprep.subr.bf16.mxu1 %v3185_v34  ;;  %1433 = vmatprep.mubr.bf16.mxu1 %v3191_v36  ;;  %v3271_v34 = vld [vmem:[%s3872_s18 + $0x10] ss:$24 sps:$4 sm:$0xff]   ;;  %v3275_v36 = vld [vmem:[%s3872_s18 + $0x1bc] ss:$24 sps:$4 sm:$0xff]  }
  0xd9   : > { %2803 = vmatpush3.bf16.msra.mxu0 %v3208_v44  ;;  %v3287_v44 = vld [vmem:[%s3872_s18 + $0x21c] ss:$24 sps:$4 sm:$0xff]  }
  0xda   : > { %2804 = vmatprep.subr.bf16.mxu0 %v3217_v50  ;;  %v1804_v50 = vld [vmem:[#allocation8] sm:$0xff] }
  0xdb   : > { %2693 = vmatpush3.bf16.msra.mxu1 %v3187_v37  ;;  %v3277_v37 = vld [vmem:[%s3872_s18 + $0x44] ss:$24 sps:$4 sm:$0xff]  }
  0xdc   : > { %2694 = vmatprep.subr.bf16.mxu1 %v3195_v38  ;;  %v3279_v38 = vld [vmem:[%s3872_s18 + $0x1b8] ss:$24 sps:$4 sm:$0xff]  }
  0xdd   : > { %2805 = vmatpush3.bf16.msra.mxu0 %v3218_v51  ;;  %v3297_v51 = vld [vmem:[%s3872_s18 + $0x248] ss:$24 sps:$4 sm:$0xff]  }
  0xde   : > { %1338 = vmatmul.mubr.bf16.gmra.mrb[8].mxu0 %v3193_v39  ;;  %1434 = vmatmul.mubr.bf16.gmra.mrb[8].mxu1 %v3194_v40  ;;  %v3280_v39 = vld [vmem:[%s3872_s18 + $0x40] ss:$24 sps:$4 sm:$0xff]   ;;  %v3281_v40 = vld [vmem:[%s3872_s18 + $0x1ec] ss:$24 sps:$4 sm:$0xff]  }
  0xdf   : > { %2695 = vmatpush3.bf16.msra.mxu1 %v3196_v42  ;;  %1345 = vmatprep.mubr.bf16.mxu0 %v3199_v45  ;;  %v3285_v42 = vld [vmem:[%s3872_s18 + $0x1e8] ss:$24 sps:$4 sm:$0xff]   ;;  %v3289_v45 = vld [vmem:[%s3872_s18 + $0xa4] ss:$24 sps:$4 sm:$0xff]  }
  0xe0   : > { %2696 = vmatprep.subr.bf16.mxu1 %v3197_v43  ;;  %1441 = vmatprep.mubr.bf16.mxu1 %v3201_v46  ;;  %v3286_v43 = vld [vmem:[%s3872_s18 + $0x70] ss:$24 sps:$4 sm:$0xff]  }
  0xe1   : > { %2806 = vmatprep.subr.bf16.mxu0 %v3231_v58  ;;  %v3291_v46 = vld [vmem:[%s3872_s18 + $0x218] ss:$24 sps:$4 sm:$0xff]   ;;  %v3307_v58 = vld [vmem:[%s3872_s18 + $0x134] ss:$24 sps:$4 sm:$0xff]  }
  0xe2   : > { %2807 = vmatpush3.bf16.msra.mxu0 %v3232_v59  ;;  %v3309_v59 = vld [vmem:[%s3872_s18 + $0x2a8] ss:$24 sps:$4 sm:$0xff]  }
  0xe3   : > { %2697 = vmatpush3.bf16.msra.mxu1 %v3198_v47  ;;  %2808 = vmatprep.subr.bf16.mxu0 %v3239_v0  ;;  %v3292_v47 = vld [vmem:[%s3872_s18 + $0xa0] ss:$24 sps:$4 sm:$0xff]  }
  0xe4   : > { %2698 = vmatprep.subr.bf16.mxu1 %v3205_v48  ;;  %v3293_v48 = vld [vmem:[%s3872_s18 + $0x24c] ss:$24 sps:$4 sm:$0xff]   ;;  %v3316_v0 = vld [vmem:[%s3872_s18 + $0x160] ss:$24 sps:$4 sm:$0xff]  }
  0xe6   : > { %1346 = vmatmul.mubr.bf16.gmra.mrb[12].mxu0 %v3203_v49  ;;  %1442 = vmatmul.mubr.bf16.gmra.mrb[12].mxu1 %v3204_v52  ;;  %v3295_v49 = vld [vmem:[%s3872_s18 + $0xd4] ss:$24 sps:$4 sm:$0xff]   ;;  %v3298_v52 = vld [vmem:[%s3872_s18 + $0xd0] ss:$24 sps:$4 sm:$0xff]  }
  0xe7   : > { %2699 = vmatpush3.bf16.msra.mxu1 %v3207_v53  ;;  %1353 = vmatprep.mubr.bf16.mxu0 %v3211_v55  ;;  %v3299_v53 = vld [vmem:[%s3872_s18 + $0x27c] ss:$24 sps:$4 sm:$0xff]   ;;  %v3303_v55 = vld [vmem:[%s3872_s18 + $0x278] ss:$24 sps:$4 sm:$0xff]  }
  0xe8   : > { %2700 = vmatprep.subr.bf16.mxu1 %v3209_v54  ;;  %1482 = vmatprep.mubr.bf16.mxu1 %v3215_v56  ;;  %v3301_v54 = vld [vmem:[%s3872_s18 + $0x104] ss:$24 sps:$4 sm:$0xff]   ;;  %v3304_v56 = vld [vmem:[%s3872_s18 + $0x100] ss:$24 sps:$4 sm:$0xff]  }
  0xe9   : > { %2809 = vmatpush3.bf16.msra.mxu0 %v3240_v1  ;;  %v3317_v1 = vld [vmem:[%s3872_s18 + $0x194] ss:$24 sps:$4 sm:$0xff]  }
  0xea   : > { %2810 = vmatprep.subr.bf16.mxu0 %v3253_v6  ;;  %v3325_v6 = vld [vmem:[%s3872_s18 + $0x1f0] ss:$24 sps:$4 sm:$0xff]  }
  0xeb   : > { %2701 = vmatpush3.bf16.msra.mxu1 %v3210_v57  ;;  %v3305_v57 = vld [vmem:[%s3872_s18 + $0x2ac] ss:$24 sps:$4 sm:$0xff]  }
  0xec   : > { %2943 = vmatprep.subr.mxu1 %v1804_v50 }
  0xed   : > { %2811 = vmatpush3.bf16.msra.mxu0 %v3254_v7  ;;  %v3326_v7 = vld [vmem:[%s3872_s18 + $0x224] ss:$24 sps:$4 sm:$0xff]  }
  0xee   : > { %1354 = vmatmul.mubr.bf16.gmra.mrb[16].mxu0 %v3216_v61  ;;  %1483 = vmatmul.mubr.bf16.vlgmr.msra.gmra.mrb[16].mxu1 %v3213_v60  ;;  %v3310_v60 = vld [vmem:[%s3872_s18 + $0x130] ss:$24 sps:$4 sm:$0xff]   ;;  %v3311_v61 = vld [vmem:[%s3872_s18 + $0x2dc] ss:$24 sps:$4 sm:$0xff]  }
  0xef   : > { %1361 = vmatprep.mubr.bf16.mxu0 %v3219_v62  ;;  %1490 = vmatprep.mubr.bf16.mxu1 %v3221_v63  ;;  %v3313_v62 = vld [vmem:[%s3872_s18 + $0x164] ss:$24 sps:$4 sm:$0xff]   ;;  %v3315_v63 = vld [vmem:[%s3872_s18 + $0x2d8] ss:$24 sps:$4 sm:$0xff]  }
  0xf0   : > { %2812 = vmatprep.subr.bf16.mxu0 %v3261_v9  ;;  %2944 = vmatpush3.msra.mxu1 %v1804_v50  ;;  %v3329_v9 = vld [vmem:[%s3872_s18 + $0x254] ss:$24 sps:$4 sm:$0xff]  }
  0xf1   : > { %2813 = vmatpush3.bf16.msra.mxu0 %v3262_v10  ;;  %v3331_v10 = vld [vmem:[%s3872_s18 + $0x250] ss:$24 sps:$4 sm:$0xff]  }
  0xf6   : > { %1362 = vmatmul.mubr.bf16.gmra.mrb[20].mxu0 %v3223_v2  ;;  %1491 = vmatmul.mubr.bf16.gmra.mrb[20].mxu1 %v3224_v3  ;;  %v3319_v2 = vld [vmem:[%s3872_s18 + $0x190] ss:$24 sps:$4 sm:$0xff]   ;;  %v3320_v3 = vld [vmem:[%s3872_s18 + $0x1c4] ss:$24 sps:$4 sm:$0xff]  }
  0xf7   : > { %1369 = vmatprep.mubr.bf16.mxu0 %v3225_v4  ;;  %1498 = vmatprep.mubr.bf16.mxu1 %v3227_v5  ;;  %v3322_v4 = vld [vmem:[%s3872_s18 + $0x1c0] ss:$24 sps:$4 sm:$0xff]   ;;  %v3323_v5 = vld [vmem:[%s3872_s18 + $0x1f4] ss:$24 sps:$4 sm:$0xff]  }
  0xfe   : > { %1370 = vmatmul.mubr.bf16.gmra.mrb[24].mxu0 %v3229_v8  ;;  %1499 = vmatmul.mubr.bf16.gmra.mrb[24].mxu1 %v3230_v11  ;;  %v3328_v8 = vld [vmem:[%s3872_s18 + $0x220] ss:$24 sps:$4 sm:$0xff]   ;;  %v3332_v11 = vld [vmem:[%s3872_s18 + $0x284] ss:$24 sps:$4 sm:$0xff]  }
  0xff   : > { %1377 = vmatprep.mubr.bf16.mxu0 %v3233_v12  ;;  %1506 = vmatprep.mubr.bf16.mxu1 %v3235_v13  ;;  %v3334_v12 = vld [vmem:[%s3872_s18 + $0x280] ss:$24 sps:$4 sm:$0xff]   ;;  %v3335_v13 = vld [vmem:[%s3872_s18 + $0x2b4] ss:$24 sps:$4 sm:$0xff]  }
 0x106   : > { %1378 = vmatmul.mubr.bf16.gmra.mrb[28].mxu0 %v3237_v14  ;;  %1507 = vmatmul.mubr.bf16.gmra.mrb[28].mxu1 %v3238_v15  ;;  %v3337_v14 = vld [vmem:[%s3872_s18 + $0x2b0] ss:$24 sps:$4 sm:$0xff]   ;;  %v3338_v15 = vld [vmem:[%s3872_s18 + $0x2e4] ss:$24 sps:$4 sm:$0xff]  }
 0x107   : > { %1385 = vmatprep.mubr.bf16.mxu0 %v3241_v16  ;;  %1514 = vmatprep.mubr.bf16.mxu1 %v3243_v17 }
 0x10e   : > { %1386 = vmatmul.mubr.bf16.gmra.mrb[32].mxu0 %v3245_v18  ;;  %1515 = vmatmul.mubr.bf16.gmra.mrb[32].mxu1 %v3246_v19  ;;  %v3340_v19 = vld [vmem:[%s3872_s18 + $0x2e0] ss:$24 sps:$4 sm:$0xff]   ;;  %s4526_s18 = sld [smem:[#allocation18_spill]] }
 0x10f   : > { %1393 = vmatprep.mubr.bf16.mxu0 %v3247_v20  ;;  %1522 = vmatprep.mubr.bf16.mxu1 %v3249_v21 }
 0x114   : > { %p4528_p4 = scmp.ne.s32.totalorder %s4526_s18, 0 }
 0x116   : > { %1394 = vmatmul.mubr.bf16.gmra.mrb[36].mxu0 %v3251_v22  ;;  %1523 = vmatmul.mubr.bf16.gmra.mrb[36].mxu1 %v3252_v23  ;;  %p3457_p1 = pnand %p3456_p11, %p4528_p4 }
 0x117   : > { %1401 = vmatprep.mubr.bf16.mxu0 %v3255_v24  ;;  %1530 = vmatprep.mubr.bf16.mxu1 %v3257_v25 }
 0x118   : > { %p3458_p13 = pneg %p3457_p1 }
 0x11a   : > { %p3465_p5 = pnand %p3464_p9, %p3458_p13 }
 0x11e   : > { %1402 = vmatmul.mubr.bf16.gmra.mrb[40].mxu0 %v3259_v26  ;;  %1531 = vmatmul.mubr.bf16.gmra.mrb[40].mxu1 %v3260_v27 }
 0x11f   : > { %1409 = vmatprep.mubr.bf16.mxu0 %v3263_v28  ;;  %1538 = vmatprep.mubr.bf16.mxu1 %v3265_v29 }
 0x126   : > { %1410 = vmatmul.mubr.bf16.gmra.mrb[44].mxu0 %v3267_v30  ;;  %1539 = vmatmul.mubr.bf16.gmra.mrb[44].mxu1 %v3268_v31 }
 0x127   : > { %1546 = vmatprep.mubr.bf16.mxu1 %v3269_v32  ;;  %1643 = vmatprep.mubr.bf16.mxu0 %v3273_v33 }
 0x12e   : > { %1547 = vmatmul.mubr.bf16.gmra.mrb[48].mxu1 %v3274_v35  ;;  %1644 = vmatmul.mubr.bf16.vlgmr.msra.gmra.mrb[48].mxu0 %v3271_v34 }
 0x12f   : > { %1554 = vmatprep.mubr.bf16.mxu1 %v3275_v36  ;;  %1651 = vmatprep.mubr.bf16.mxu0 %v3277_v37 }
 0x136   : > { %1555 = vmatmul.mubr.bf16.gmra.mrb[52].mxu1 %v3279_v38  ;;  %1652 = vmatmul.mubr.bf16.gmra.mrb[52].mxu0 %v3280_v39 }
 0x137   : > { %1562 = vmatprep.mubr.bf16.mxu1 %v3281_v40  ;;  %1659 = vmatprep.mubr.bf16.mxu0 %v3283_v41 }
 0x13e   : > { %1563 = vmatmul.mubr.bf16.gmra.mrb[56].mxu1 %v3285_v42  ;;  %1660 = vmatmul.mubr.bf16.gmra.mrb[56].mxu0 %v3286_v43 }
 0x13f   : > { %1570 = vmatprep.mubr.bf16.mxu1 %v3287_v44  ;;  %1667 = vmatprep.mubr.bf16.mxu0 %v3289_v45 }
 0x146   : > { %1571 = vmatmul.mubr.bf16.gmra.mrb[60].mxu1 %v3291_v46  ;;  %1668 = vmatmul.mubr.bf16.gmra.mrb[60].mxu0 %v3292_v47 }
 0x147   : > { %1578 = vmatprep.mubr.bf16.mxu1 %v3293_v48  ;;  %1675 = vmatprep.mubr.bf16.mxu0 %v3295_v49 }
 0x14e   : > { %1579 = vmatmul.mubr.bf16.gmra.mrb[64].mxu1 %v3297_v51  ;;  %1676 = vmatmul.mubr.bf16.gmra.mrb[64].mxu0 %v3298_v52 }
 0x14f   : > { %1586 = vmatprep.mubr.bf16.mxu1 %v3299_v53  ;;  %1683 = vmatprep.mubr.bf16.mxu0 %v3301_v54 }
 0x156   : > { %1587 = vmatmul.mubr.bf16.gmra.mrb[68].mxu1 %v3303_v55  ;;  %1684 = vmatmul.mubr.bf16.gmra.mrb[68].mxu0 %v3304_v56 }
 0x157   : > { %1594 = vmatprep.mubr.bf16.mxu1 %v3305_v57  ;;  %1691 = vmatprep.mubr.bf16.mxu0 %v3307_v58 }
 0x15e   : > { %1595 = vmatmul.mubr.bf16.gmra.mrb[72].mxu1 %v3309_v59  ;;  %1692 = vmatmul.mubr.bf16.gmra.mrb[72].mxu0 %v3310_v60 }
 0x15f   : > { %1602 = vmatprep.mubr.bf16.mxu1 %v3311_v61  ;;  %1699 = vmatprep.mubr.bf16.mxu0 %v3313_v62 }
 0x166   : > { %1603 = vmatmul.mubr.bf16.gmra.mrb[76].mxu1 %v3315_v63  ;;  %1700 = vmatmul.mubr.bf16.gmra.mrb[76].mxu0 %v3316_v0 }
 0x167   : > { %1707 = vmatprep.mubr.bf16.mxu0 %v3317_v1  ;;  %v4142_v1 = vld [vmem:[#allocation6] ss:$0 sm:$0xff] }
 0x16e   : > { %1708 = vmatmul.mubr.bf16.gmra.mrb[80].mxu0 %v3319_v2 }
 0x16f   : > { %1715 = vmatprep.mubr.bf16.mxu0 %v3320_v3 }
 0x176   : > { %1716 = vmatmul.mubr.bf16.gmra.mrb[84].mxu0 %v3322_v4 }
 0x177   : > { %1723 = vmatprep.mubr.bf16.mxu0 %v3323_v5 }
 0x17e   : > { %1724 = vmatmul.mubr.bf16.gmra.mrb[88].mxu0 %v3325_v6 }
 0x17f   : > { %1731 = vmatprep.mubr.bf16.mxu0 %v3326_v7 }
 0x186   : > { %1732 = vmatmul.mubr.bf16.gmra.mrb[92].mxu0 %v3328_v8 }
 0x187   : > { %1739 = vmatprep.mubr.bf16.mxu0 %v3329_v9 }
 0x18e   : > { %1740 = vmatmul.mubr.bf16.gmra.mrb[96].mxu0 %v3331_v10 }
 0x18f   : > { %1747 = vmatprep.mubr.bf16.mxu0 %v3332_v11 }
 0x196   : > { %1748 = vmatmul.mubr.bf16.gmra.mrb[100].mxu0 %v3334_v12 }
 0x197   : > { %1755 = vmatprep.mubr.bf16.mxu0 %v3335_v13 }
 0x19e   : > { %1756 = vmatmul.mubr.bf16.gmra.mrb[104].mxu0 %v3337_v14 }
 0x19f   : > { %1763 = vmatprep.mubr.bf16.mxu0 %v3338_v15 }
 0x1a1   : > { %v2590_v16 = vpop.f32.mrb[0].mxu0  ;;  %v2662_v17 = vpop.f32.mrb[0].mxu1 }
 0x1a2   : > { %v2591_v18 = vpop.f32.mrb[1].mxu0  ;;  %v2663_v20 = vpop.f32.mrb[1].mxu1 }
 0x1a3   : > { %v2592_v21 = vadd.f32 %v2591_v18, %v2590_v16  ;;  %v2593_v22 = vpop.f32.mrb[2].mxu0  ;;  %v4126_v23 = vadd.f32 %v2663_v20, %v2662_v17  ;;  %v2665_v24 = vpop.f32.mrb[2].mxu1 }
 0x1a4   : > { %v2594_v25 = vpop.f32.mrb[3].mxu0  ;;  %v2666_v26 = vpop.f32.mrb[3].mxu1 }
 0x1a5   : > { %v2595_v27 = vadd.f32 %v2594_v25, %v2593_v22  ;;  %v4128_v28 = vadd.f32 %v2666_v26, %v2665_v24  ;;  %v1324_v6 = vadd.f32 %v2592_v21, %v4142_v1 }
 0x1a6   : > { %1764 = vmatmul.mubr.bf16.gmra.mrb[108].mxu0 %v3340_v19 }
 0x1a7   : > { %v1327_v13 = vadd.f32 %v2595_v27, %v4142_v1 }
 0x1a9   : > { %v2596_v29 = vpop.f32.mrb[4].mxu0  ;;  %v2668_v30 = vpop.f32.mrb[4].mxu1 }
 0x1aa   : > { %v2597_v31 = vpop.f32.mrb[5].mxu0  ;;  %v2669_v32 = vpop.f32.mrb[5].mxu1 }
 0x1ab   : > { %v2598_v33 = vadd.f32 %v2597_v31, %v2596_v29  ;;  %v2599_v34 = vpop.f32.mrb[6].mxu0  ;;  %v4130_v35 = vadd.f32 %v2669_v32, %v2668_v30  ;;  %v2671_v36 = vpop.f32.mrb[6].mxu1 }
 0x1ac   : > { %v2600_v37 = vpop.f32.mrb[7].mxu0  ;;  %v2672_v38 = vpop.f32.mrb[7].mxu1 }
 0x1ad   : > { %v2601_v39 = vadd.f32 %v2600_v37, %v2599_v34  ;;  %v4132_v40 = vadd.f32 %v2672_v38, %v2671_v36  ;;  %v1332_v21 = vadd.f32 %v2598_v33, %v4142_v1 }
 0x1af   : > { %v1335_v27 = vadd.f32 %v2601_v39, %v4142_v1 }
 0x1b1   : > { %v2602_v41 = vpop.f32.mrb[8].mxu0  ;;  %v2674_v42 = vpop.f32.mrb[8].mxu1 }
 0x1b2   : > { %v2603_v43 = vpop.f32.mrb[9].mxu0  ;;  %v2675_v44 = vpop.f32.mrb[9].mxu1 }
 0x1b3   : > { %v2604_v45 = vadd.f32 %v2603_v43, %v2602_v41  ;;  %v2605_v46 = vpop.f32.mrb[10].mxu0  ;;  %v4134_v47 = vadd.f32 %v2675_v44, %v2674_v42  ;;  %v2677_v48 = vpop.f32.mrb[10].mxu1 }
 0x1b4   : > { %v2606_v49 = vpop.f32.mrb[11].mxu0  ;;  %v2678_v50 = vpop.f32.mrb[11].mxu1 }
 0x1b5   : > { %v2607_v51 = vadd.f32 %v2606_v49, %v2605_v46  ;;  %v4136_v52 = vadd.f32 %v2678_v50, %v2677_v48  ;;  %v1340_v33 = vadd.f32 %v2604_v45, %v4142_v1 }
 0x1b7   : > { %v1343_v39 = vadd.f32 %v2607_v51, %v4142_v1 }
 0x1b9   : > { %v2608_v53 = vpop.f32.mrb[12].mxu0  ;;  %v2680_v54 = vpop.f32.mrb[12].mxu1 }
 0x1ba   : > { %v2609_v55 = vpop.f32.mrb[13].mxu0  ;;  %v2681_v56 = vpop.f32.mrb[13].mxu1 }
 0x1bb   : > { %v2610_v57 = vadd.f32 %v2609_v55, %v2608_v53  ;;  %v2611_v58 = vpop.f32.mrb[14].mxu0  ;;  %v4138_v59 = vadd.f32 %v2681_v56, %v2680_v54  ;;  %v2683_v60 = vpop.f32.mrb[14].mxu1 }
 0x1bc   : > { %v2612_v61 = vpop.f32.mrb[15].mxu0  ;;  %v2684_v62 = vpop.f32.mrb[15].mxu1 }
 0x1bd   : > { %v2613_v63 = vadd.f32 %v2612_v61, %v2611_v58  ;;  %v4140_v0 = vadd.f32 %v2684_v62, %v2683_v60  ;;  %v1348_v45 = vadd.f32 %v2610_v57, %v4142_v1 }
 0x1bf   : > { %v1351_v51 = vadd.f32 %v2613_v63, %v4142_v1 }
 0x1c1   : > { %v2614_v2 = vpop.f32.mrb[16].mxu0  ;;  %v2702_v3 = vpop.f32.mrb[16].mxu1 }
 0x1c2   : > { %v2615_v4 = vpop.f32.mrb[17].mxu0  ;;  %v2703_v5 = vpop.f32.mrb[17].mxu1 }
 0x1c3   : > { %v4145_v7 = vadd.f32 %v2615_v4, %v2614_v2  ;;  %v2704_v8 = vadd.f32 %v2703_v5, %v2702_v3  ;;  %v2617_v9 = vpop.f32.mrb[18].mxu0  ;;  %v2705_v10 = vpop.f32.mrb[18].mxu1 }
 0x1c4   : > { %v2618_v11 = vpop.f32.mrb[19].mxu0  ;;  %v2706_v12 = vpop.f32.mrb[19].mxu1 }
 0x1c5   : > { %v4148_v14 = vadd.f32 %v2704_v8, %v1324_v6  ;;  %v2619_v15 = vadd.f32 %v2618_v11, %v2617_v9  ;;  %v2707_v16 = vadd.f32 %v2706_v12, %v2705_v10  ;;  %v1356_v57 = vadd.f32 %v4145_v7, %v4142_v1 }
 0x1c7   : > { %v4150_v17 = vadd.f32 %v2707_v16, %v1327_v13 }
 0x1c9   : > { %v2620_v18 = vpop.f32.mrb[20].mxu0  ;;  %v2708_v19 = vpop.f32.mrb[20].mxu1 }
 0x1ca   : > { %v2621_v20 = vpop.f32.mrb[21].mxu0  ;;  %v2709_v22 = vpop.f32.mrb[21].mxu1 }
 0x1cb   : > { %v4153_v24 = vadd.f32 %v2621_v20, %v2620_v18  ;;  %v2710_v25 = vadd.f32 %v2709_v22, %v2708_v19  ;;  %v2623_v26 = vpop.f32.mrb[22].mxu0  ;;  %v2711_v29 = vpop.f32.mrb[22].mxu1 }
 0x1cc   : > { %v2624_v30 = vpop.f32.mrb[23].mxu0  ;;  %v2712_v31 = vpop.f32.mrb[23].mxu1 }
 0x1cd   : > { %v4156_v32 = vadd.f32 %v2710_v25, %v1332_v21  ;;  %v2625_v34 = vadd.f32 %v2624_v30, %v2623_v26  ;;  %v2713_v36 = vadd.f32 %v2712_v31, %v2711_v29  ;;  %v1359_v30 = vadd.f32 %v2619_v15, %v4142_v1 }
 0x1ce   : > { %v1364_v7 = vadd.f32 %v4153_v24, %v4142_v1 }
 0x1cf   : > { %v4158_v37 = vadd.f32 %v2713_v36, %v1335_v27 }
 0x1d1   : > { %v2626_v38 = vpop.f32.mrb[24].mxu0  ;;  %v2714_v41 = vpop.f32.mrb[24].mxu1 }
 0x1d2   : > { %v2627_v42 = vpop.f32.mrb[25].mxu0  ;;  %v2715_v43 = vpop.f32.mrb[25].mxu1 }
 0x1d3   : > { %v4161_v44 = vadd.f32 %v2627_v42, %v2626_v38  ;;  %v2716_v46 = vadd.f32 %v2715_v43, %v2714_v41  ;;  %v2629_v48 = vpop.f32.mrb[26].mxu0  ;;  %v2717_v49 = vpop.f32.mrb[26].mxu1 }
 0x1d4   : > { %v2630_v50 = vpop.f32.mrb[27].mxu0  ;;  %v2718_v53 = vpop.f32.mrb[27].mxu1 }
 0x1d5   : > { %v4164_v54 = vadd.f32 %v2716_v46, %v1340_v33  ;;  %v2631_v55 = vadd.f32 %v2630_v50, %v2629_v48  ;;  %v2719_v56 = vadd.f32 %v2718_v53, %v2717_v49 }
 0x1d7   : > { %v4166_v58 = vadd.f32 %v2719_v56, %v1343_v39  ;;  %v1367_v39 = vadd.f32 %v2625_v34, %v4142_v1 }
 0x1d9   : > { %v2632_v60 = vpop.f32.mrb[28].mxu0  ;;  %v2720_v61 = vpop.f32.mrb[28].mxu1 }
 0x1da   : > { %v2633_v62 = vpop.f32.mrb[29].mxu0  ;;  %v2721_v2 = vpop.f32.mrb[29].mxu1 }
 0x1db   : > { %v4169_v3 = vadd.f32 %v2633_v62, %v2632_v60  ;;  %v2722_v4 = vadd.f32 %v2721_v2, %v2720_v61  ;;  %v2635_v5 = vpop.f32.mrb[30].mxu0  ;;  %v2723_v6 = vpop.f32.mrb[30].mxu1 }
 0x1dc   : > { %v2636_v8 = vpop.f32.mrb[31].mxu0  ;;  %v2724_v9 = vpop.f32.mrb[31].mxu1 }
 0x1dd   : > { %v4172_v10 = vadd.f32 %v2722_v4, %v1348_v45  ;;  %v2637_v11 = vadd.f32 %v2636_v8, %v2635_v5  ;;  %v2725_v12 = vadd.f32 %v2724_v9, %v2723_v6  ;;  %v1372_v5 = vadd.f32 %v4161_v44, %v4142_v1 }
 0x1df   : > { %v4174_v13 = vadd.f32 %v2725_v12, %v1351_v51 }
 0x1e1   : > { %v2638_v16 = vpop.f32.mrb[32].mxu0  ;;  %v2726_v18 = vpop.f32.mrb[32].mxu1 }
 0x1e2   : > { %v2639_v19 = vpop.f32.mrb[33].mxu0  ;;  %v2727_v20 = vpop.f32.mrb[33].mxu1 }
 0x1e3   : > { %v4178_v22 = vadd.f32 %v2639_v19, %v2638_v16  ;;  %v2728_v21 = vadd.f32 %v2727_v20, %v2726_v18  ;;  %v2641_v25 = vpop.f32.mrb[34].mxu0  ;;  %v2729_v26 = vpop.f32.mrb[34].mxu1  ;;  %v1375_v16 = vadd.f32 %v2631_v55, %v4142_v1 }
 0x1e4   : > { %v2642_v29 = vpop.f32.mrb[35].mxu0  ;;  %v2730_v63 = vpop.f32.mrb[35].mxu1 }
 0x1e5   : > { %v4181_v31 = vadd.f32 %v2728_v21, %v1356_v57  ;;  %v2643_v27 = vadd.f32 %v2642_v29, %v2641_v25  ;;  %v2731_v36 = vadd.f32 %v2730_v63, %v2729_v26  ;;  %v1380_v29 = vadd.f32 %v4169_v3, %v4142_v1 }
 0x1e7   : > { %v4183_v38 = vadd.f32 %v2731_v36, %v1359_v30 }
 0x1e9   : > { %v2644_v41 = vpop.f32.mrb[36].mxu0  ;;  %v2732_v42 = vpop.f32.mrb[36].mxu1 }
 0x1ea   : > { %v2645_v43 = vpop.f32.mrb[37].mxu0  ;;  %v2733_v33 = vpop.f32.mrb[37].mxu1 }
 0x1eb   : > { %v4187_v46 = vadd.f32 %v2645_v43, %v2644_v41  ;;  %v2734_v48 = vadd.f32 %v2733_v33, %v2732_v42  ;;  %v2647_v49 = vpop.f32.mrb[38].mxu0  ;;  %v2735_v50 = vpop.f32.mrb[38].mxu1  ;;  %v1383_v43 = vadd.f32 %v2637_v11, %v4142_v1  ;;  %v1391_v11 = vadd.f32 %v2643_v27, %v4142_v1 }
 0x1ec   : > { %v2648_v53 = vpop.f32.mrb[39].mxu0  ;;  %v2736_v15 = vpop.f32.mrb[39].mxu1 }
 0x1ed   : > { %v4190_v56 = vadd.f32 %v2734_v48, %v1364_v7  ;;  %v4192_v60 = vadd.f32 %v2648_v53, %v2647_v49  ;;  %v2737_v61 = vadd.f32 %v2736_v15, %v2735_v50 }
 0x1ef   : > { %v4194_v62 = vadd.f32 %v2737_v61, %v1367_v39  ;;  %v1388_v39 = vadd.f32 %v4178_v22, %v4142_v1 }
 0x1f1   : > { %v2650_v2 = vpop.f32.mrb[40].mxu0  ;;  %v2738_v45 = vpop.f32.mrb[40].mxu1 }
 0x1f2   : > { %v2651_v4 = vpop.f32.mrb[41].mxu0  ;;  %v2739_v24 = vpop.f32.mrb[41].mxu1 }
 0x1f3   : > { %v4198_v6 = vadd.f32 %v2651_v4, %v2650_v2  ;;  %v2740_v8 = vadd.f32 %v2739_v24, %v2738_v45  ;;  %v2653_v9 = vpop.f32.mrb[42].mxu0  ;;  %v2741_v51 = vpop.f32.mrb[42].mxu1 }
 0x1f4   : > { %v2654_v34 = vpop.f32.mrb[43].mxu0  ;;  %v2742_v12 = vpop.f32.mrb[43].mxu1 }
 0x1f5   : > { %v4201_v18 = vadd.f32 %v2740_v8, %v1372_v5  ;;  %v4203_v19 = vadd.f32 %v2654_v34, %v2653_v9  ;;  %v2743_v20 = vadd.f32 %v2742_v12, %v2741_v51 }
 0x1f7   : > { %v4205_v57 = vadd.f32 %v2743_v20, %v1375_v16 }
 0x1f9   : > { %v2656_v21 = vpop.f32.mrb[44].mxu0  ;;  %v2744_v25 = vpop.f32.mrb[44].mxu1 }
 0x1fa   : > { %v2657_v26 = vpop.f32.mrb[45].mxu0  ;;  %v2745_v44 = vpop.f32.mrb[45].mxu1 }
 0x1fb   : > { %v4209_v63 = vadd.f32 %v2657_v26, %v2656_v21  ;;  %v2746_v30 = vadd.f32 %v2745_v44, %v2744_v25  ;;  %v2659_v36 = vpop.f32.mrb[46].mxu0  ;;  %v2747_v41 = vpop.f32.mrb[46].mxu1  ;;  %v1396_v44 = vadd.f32 %v4187_v46, %v4142_v1 }
 0x1fc   : > { %v2660_v55 = vpop.f32.mrb[47].mxu0  ;;  %v2748_v42 = vpop.f32.mrb[47].mxu1 }
 0x1fd   : > { %v4212_v33 = vadd.f32 %v2746_v30, %v1380_v29  ;;  %v4214_v7 = vadd.f32 %v2660_v55, %v2659_v36  ;;  %v2749_v48 = vadd.f32 %v2748_v42, %v2747_v41  ;;  %v1399_v41 = vadd.f32 %v4192_v60, %v4142_v1 }
 0x1ff   : > { %v4216_v49 = vadd.f32 %v2749_v48, %v1383_v43 }
 0x201   : > { %v2750_v50 = vpop.f32.mrb[48].mxu1  ;;  %v2814_v53 = vpop.f32.mrb[48].mxu0 }
 0x202   : > { %v2751_v15 = vpop.f32.mrb[49].mxu1  ;;  %v2815_v3 = vpop.f32.mrb[49].mxu0 }
 0x203   : > { %v2752_v61 = vadd.f32 %v2751_v15, %v2750_v50  ;;  %v2816_v2 = vadd.f32 %v2815_v3, %v2814_v53  ;;  %v2753_v45 = vpop.f32.mrb[50].mxu1  ;;  %v2817_v4 = vpop.f32.mrb[50].mxu0 }
 0x204   : > { %v2754_v24 = vpop.f32.mrb[51].mxu1  ;;  %v2818_v5 = vpop.f32.mrb[51].mxu0 }
 0x205   : > { %v4221_v8 = vadd.f32 %v2752_v61, %v1388_v39  ;;  %v1646_v9 = vadd.f32 %v2816_v2, %v4148_v14  ;;  %v2755_v51 = vadd.f32 %v2754_v24, %v2753_v45  ;;  %v2819_v34 = vadd.f32 %v2818_v5, %v2817_v4 }
 0x206   : > { %v1404_v45 = vadd.f32 %v4198_v6, %v4142_v1  ;;  %v1407_v5 = vadd.f32 %v4203_v19, %v4142_v1 }
 0x207   : > { %v1772_v12 = vmax.f32 %v1646_v9, 0.0  ;;  %v4224_v16 = vadd.f32 %v2755_v51, %v1391_v11  ;;  %v1649_v22 = vadd.f32 %v2819_v34, %v4150_v17 }
 0x209   : > { %v1773_v20 = vmax.f32 %v1649_v22, 0.0  ;;  %v2756_v21 = vpop.f32.mrb[52].mxu1  ;;  %v2820_v25 = vpop.f32.mrb[52].mxu0  ;;  %2945 = vmatprep.mubr.msk.f32.mxu1 %vm1812_vm0, %v1772_v12 }
 0x20a   : > { %v2757_v27 = vpop.f32.mrb[53].mxu1  ;;  %v2821_v26 = vpop.f32.mrb[53].mxu0 }
 0x20b   : > { %v2758_v29 = vadd.f32 %v2757_v27, %v2756_v21  ;;  %v2822_v14 = vadd.f32 %v2821_v26, %v2820_v25  ;;  %v2759_v30 = vpop.f32.mrb[54].mxu1  ;;  %v2823_v36 = vpop.f32.mrb[54].mxu0  ;;  %2946 = vmatmul.mubr.msk.f32.vlgmr.msra.gmra.mrb[80].mxu1 %vm1812_vm0, %v1773_v20 }
 0x20c   : > { %v2760_v17 = vpop.f32.mrb[55].mxu1  ;;  %v2824_v55 = vpop.f32.mrb[55].mxu0 }
 0x20d   : > { %v4233_v42 = vadd.f32 %v2758_v29, %v1396_v44  ;;  %v1654_v43 = vadd.f32 %v2822_v14, %v4156_v32  ;;  %v2761_v48 = vadd.f32 %v2760_v17, %v2759_v30  ;;  %v2825_v50 = vadd.f32 %v2824_v55, %v2823_v36 }
 0x20e   : > { %v1412_v29 = vadd.f32 %v4209_v63, %v4142_v1 }
 0x20f   : > { %v1774_v53 = vmax.f32 %v1654_v43, 0.0  ;;  %v4236_v15 = vadd.f32 %v2761_v48, %v1399_v41  ;;  %v1657_v46 = vadd.f32 %v2825_v50, %v4158_v37  ;;  %v1415_v41 = vadd.f32 %v4214_v7, %v4142_v1 }
 0x211   : > { %v1775_v3 = vmax.f32 %v1657_v46, 0.0  ;;  %v2762_v39 = vpop.f32.mrb[56].mxu1  ;;  %v2826_v61 = vpop.f32.mrb[56].mxu0  ;;  %2948 = vmatprep.mubr.msk.f32.mxu1 %vm1812_vm0, %v1774_v53 }
 0x212   : > { %v2763_v2 = vpop.f32.mrb[57].mxu1  ;;  %v2827_v60 = vpop.f32.mrb[57].mxu0 }
 0x213   : > { %v2764_v4 = vadd.f32 %v2763_v2, %v2762_v39  ;;  %v2828_v11 = vadd.f32 %v2827_v60, %v2826_v61  ;;  %v2765_v32 = vpop.f32.mrb[58].mxu1  ;;  %v2829_v24 = vpop.f32.mrb[58].mxu0  ;;  %2949 = vmatmul.mubr.msk.f32.gmra.mrb[82].mxu1 %vm1812_vm0, %v1775_v3  ;;  %v1420_v60 = vadd.f32 %v4126_v23, %v4142_v1 }
 0x214   : > { %v2766_v37 = vpop.f32.mrb[59].mxu1  ;;  %v2830_v9 = vpop.f32.mrb[59].mxu0 }
 0x215   : > { %v4245_v51 = vadd.f32 %v2764_v4, %v1404_v45  ;;  %v1662_v34 = vadd.f32 %v2828_v11, %v4164_v54  ;;  %v2767_v12 = vadd.f32 %v2766_v37, %v2765_v32  ;;  %v2831_v22 = vadd.f32 %v2830_v9, %v2829_v24 }
 0x216   : > { %v1423_v32 = vadd.f32 %v4128_v28, %v4142_v1 }
 0x217   : > { %v1776_v20 = vmax.f32 %v1662_v34, 0.0  ;;  %v4248_v21 = vadd.f32 %v2767_v12, %v1407_v5  ;;  %v1665_v6 = vadd.f32 %v2831_v22, %v4166_v58 }
 0x219   : > { %v1777_v25 = vmax.f32 %v1665_v6, 0.0  ;;  %v2768_v27 = vpop.f32.mrb[60].mxu1  ;;  %v2832_v26 = vpop.f32.mrb[60].mxu0  ;;  %2951 = vmatprep.mubr.msk.f32.mxu1 %vm1812_vm0, %v1776_v20 }
 0x21a   : > { %v2769_v44 = vpop.f32.mrb[61].mxu1  ;;  %v2833_v19 = vpop.f32.mrb[61].mxu0 }
 0x21b   : > { %v2770_v14 = vadd.f32 %v2769_v44, %v2768_v27  ;;  %v2834_v30 = vadd.f32 %v2833_v19, %v2832_v26  ;;  %v2771_v54 = vpop.f32.mrb[62].mxu1  ;;  %v2835_v36 = vpop.f32.mrb[62].mxu0  ;;  %2952 = vmatmul.mubr.msk.f32.gmra.mrb[84].mxu1 %vm1812_vm0, %v1777_v25  ;;  %v1428_v26 = vadd.f32 %v4130_v35, %v4142_v1 }
 0x21c   : > { %v2772_v58 = vpop.f32.mrb[63].mxu1  ;;  %v2836_v17 = vpop.f32.mrb[63].mxu0 }
 0x21d   : > { %v4257_v55 = vadd.f32 %v2770_v14, %v1412_v29  ;;  %v1670_v43 = vadd.f32 %v2834_v30, %v4172_v10  ;;  %v2773_v48 = vadd.f32 %v2772_v58, %v2771_v54  ;;  %v2837_v50 = vadd.f32 %v2836_v17, %v2835_v36 }
 0x21e   : > { %v1431_v14 = vadd.f32 %v4132_v40, %v4142_v1 }
 0x21f   : > { %v1778_v53 = vmax.f32 %v1670_v43, 0.0  ;;  %v4260_v46 = vadd.f32 %v2773_v48, %v1415_v41  ;;  %v1673_v63 = vadd.f32 %v2837_v50, %v4174_v13 }
 0x221   : > { %v1779_v3 = vmax.f32 %v1673_v63, 0.0  ;;  %v2774_v39 = vpop.f32.mrb[64].mxu1  ;;  %v2838_v61 = vpop.f32.mrb[64].mxu0  ;;  %2954 = vmatprep.mubr.msk.f32.mxu1 %vm1812_vm0, %v1778_v53 }
 0x222   : > { %v2775_v2 = vpop.f32.mrb[65].mxu1  ;;  %v2839_v7 = vpop.f32.mrb[65].mxu0 }
 0x223   : > { %v2776_v45 = vadd.f32 %v2775_v2, %v2774_v39  ;;  %v2840_v4 = vadd.f32 %v2839_v7, %v2838_v61  ;;  %v2777_v10 = vpop.f32.mrb[66].mxu1  ;;  %v2841_v11 = vpop.f32.mrb[66].mxu0  ;;  %2955 = vmatmul.mubr.msk.f32.gmra.mrb[86].mxu1 %vm1812_vm0, %v1779_v3  ;;  %v1436_v3 = vadd.f32 %v4134_v47, %v4142_v1  ;;  %v1439_v7 = vadd.f32 %v4136_v52, %v4142_v1 }
 0x224   : > { %v2778_v13 = vpop.f32.mrb[67].mxu1  ;;  %v2842_v24 = vpop.f32.mrb[67].mxu0 }
 0x225   : > { %v4269_v5 = vadd.f32 %v2776_v45, %v1420_v60  ;;  %v1678_v37 = vadd.f32 %v2840_v4, %v4181_v31  ;;  %v2779_v9 = vadd.f32 %v2778_v13, %v2777_v10  ;;  %v2843_v34 = vadd.f32 %v2842_v24, %v2841_v11 }
 0x227   : > { %v1780_v12 = vmax.f32 %v1678_v37, 0.0  ;;  %v4272_v22 = vadd.f32 %v2779_v9, %v1423_v32  ;;  %v1681_v23 = vadd.f32 %v2843_v34, %v4183_v38 }
 0x229   : > { %v1781_v20 = vmax.f32 %v1681_v23, 0.0  ;;  %v2780_v6 = vpop.f32.mrb[68].mxu1  ;;  %v2844_v25 = vpop.f32.mrb[68].mxu0  ;;  %2957 = vmatprep.mubr.msk.f32.mxu1 %vm1812_vm0, %v1780_v12  ;;  %v1444_v12 = vadd.f32 %v4138_v59, %v4142_v1 }
 0x22a   : > { %v2781_v27 = vpop.f32.mrb[69].mxu1  ;;  %v2845_v28 = vpop.f32.mrb[69].mxu0 }
 0x22b   : > { %v2782_v44 = vadd.f32 %v2781_v27, %v2780_v6  ;;  %v2846_v19 = vadd.f32 %v2845_v28, %v2844_v25  ;;  %v2783_v31 = vpop.f32.mrb[70].mxu1  ;;  %v2847_v29 = vpop.f32.mrb[70].mxu0  ;;  %2958 = vmatmul.mubr.msk.f32.gmra.mrb[88].mxu1 %vm1812_vm0, %v1781_v20  ;;  %v1447_v25 = vadd.f32 %v4140_v0, %v4142_v1 }
 0x22c   : > { %v2784_v38 = vpop.f32.mrb[71].mxu1  ;;  %v2848_v30 = vpop.f32.mrb[71].mxu0 }
 0x22d   : > { %v4281_v54 = vadd.f32 %v2782_v44, %v1428_v26  ;;  %v1686_v36 = vadd.f32 %v2846_v19, %v4190_v56  ;;  %v2785_v41 = vadd.f32 %v2784_v38, %v2783_v31  ;;  %v2849_v58 = vadd.f32 %v2848_v30, %v2847_v29 }
 0x22f   : > { %v1782_v17 = vmax.f32 %v1686_v36, 0.0  ;;  %v4284_v43 = vadd.f32 %v2785_v41, %v1431_v14  ;;  %v1689_v35 = vadd.f32 %v2849_v58, %v4194_v62 }
 0x231   : > { %v1783_v48 = vmax.f32 %v1689_v35, 0.0  ;;  %v2786_v50 = vpop.f32.mrb[72].mxu1  ;;  %v2850_v53 = vpop.f32.mrb[72].mxu0  ;;  %2960 = vmatprep.mubr.msk.f32.mxu1 %vm1812_vm0, %v1782_v17 }
 0x232   : > { %v2787_v63 = vpop.f32.mrb[73].mxu1  ;;  %v2851_v40 = vpop.f32.mrb[73].mxu0 }
 0x233   : > { %v2788_v39 = vadd.f32 %v2787_v63, %v2786_v50  ;;  %v2852_v61 = vadd.f32 %v2851_v40, %v2850_v53  ;;  %v2789_v56 = vpop.f32.mrb[74].mxu1  ;;  %v2853_v2 = vpop.f32.mrb[74].mxu0  ;;  %2961 = vmatmul.mubr.msk.f32.gmra.mrb[90].mxu1 %vm1812_vm0, %v1783_v48 }
 0x234   : > { %v2790_v62 = vpop.f32.mrb[75].mxu1  ;;  %v2854_v60 = vpop.f32.mrb[75].mxu0 }
 0x235   : > { %v4293_v45 = vadd.f32 %v2788_v39, %v1436_v3  ;;  %v1694_v4 = vadd.f32 %v2852_v61, %v4201_v18  ;;  %v2791_v10 = vadd.f32 %v2790_v62, %v2789_v56  ;;  %v2855_v11 = vadd.f32 %v2854_v60, %v2853_v2 }
 0x237   : > { %v1784_v32 = vmax.f32 %v1694_v4, 0.0  ;;  %v4296_v13 = vadd.f32 %v2791_v10, %v1439_v7  ;;  %v1697_v47 = vadd.f32 %v2855_v11, %v4205_v57 }
 0x239   : > { %v1785_v24 = vmax.f32 %v1697_v47, 0.0  ;;  %v2792_v37 = vpop.f32.mrb[76].mxu1  ;;  %v2856_v9 = vpop.f32.mrb[76].mxu0  ;;  %2963 = vmatprep.mubr.msk.f32.mxu1 %vm1812_vm0, %v1784_v32 }
 0x23a   : > { %v2793_v34 = vpop.f32.mrb[77].mxu1  ;;  %v2857_v52 = vpop.f32.mrb[77].mxu0 }
 0x23b   : > { %v2794_v23 = vadd.f32 %v2793_v34, %v2792_v37  ;;  %v2858_v20 = vadd.f32 %v2857_v52, %v2856_v9  ;;  %v2795_v18 = vpop.f32.mrb[78].mxu1  ;;  %v2859_v6 = vpop.f32.mrb[78].mxu0  ;;  %2964 = vmatmul.mubr.msk.f32.gmra.mrb[92].mxu1 %vm1812_vm0, %v1785_v24 }
 0x23c   : > { %v2796_v57 = vpop.f32.mrb[79].mxu1  ;;  %v2860_v27 = vpop.f32.mrb[79].mxu0 }
 0x23d   : > { %v4305_v28 = vadd.f32 %v2794_v23, %v1444_v12  ;;  %v1702_v26 = vadd.f32 %v2858_v20, %v4212_v33  ;;  %v2797_v44 = vadd.f32 %v2796_v57, %v2795_v18  ;;  %v2861_v19 = vadd.f32 %v2860_v27, %v2859_v6 }
 0x23f   : > { %v1786_v31 = vmax.f32 %v1702_v26, 0.0  ;;  %v4308_v29 = vadd.f32 %v2797_v44, %v1447_v25  ;;  %v1705_v59 = vadd.f32 %v2861_v19, %v4216_v49 }
 0x241   : > { %v1787_v14 = vmax.f32 %v1705_v59, 0.0  ;;  %v2862_v38 = vpop.f32.mrb[80].mxu0  ;;  %2966 = vmatprep.mubr.msk.f32.mxu1 %vm1812_vm0, %v1786_v31 }
 0x242   : > { %v2863_v30 = vpop.f32.mrb[81].mxu0 }
 0x243   : > { %v2864_v36 = vadd.f32 %v2863_v30, %v2862_v38  ;;  %v2865_v0 = vpop.f32.mrb[82].mxu0  ;;  %2967 = vmatmul.mubr.msk.f32.gmra.mrb[94].mxu1 %vm1812_vm0, %v1787_v14 }
 0x244   : > { %v2866_v1 = vpop.f32.mrb[83].mxu0 }
 0x245   : > { %v1710_v41 = vadd.f32 %v2864_v36, %v4221_v8  ;;  %v2867_v33 = vadd.f32 %v2866_v1, %v2865_v0 }
 0x247   : > { %v1788_v58 = vmax.f32 %v1710_v41, 0.0  ;;  %v1713_v17 = vadd.f32 %v2867_v33, %v4224_v16 }
 0x249   : > { %v1789_v35 = vmax.f32 %v1713_v17, 0.0  ;;  %v2868_v48 = vpop.f32.mrb[84].mxu0  ;;  %2969 = vmatprep.mubr.msk.f32.mxu1 %vm1812_vm0, %v1788_v58 }
 0x24a   : > { %v2869_v49 = vpop.f32.mrb[85].mxu0 }
 0x24b   : > { %v2870_v50 = vadd.f32 %v2869_v49, %v2868_v48  ;;  %v2871_v53 = vpop.f32.mrb[86].mxu0  ;;  %2970 = vmatmul.mubr.msk.f32.gmra.mrb[96].mxu1 %vm1812_vm0, %v1789_v35 }
 0x24c   : > { %v2872_v63 = vpop.f32.mrb[87].mxu0 }
 0x24d   : > { %v1718_v40 = vadd.f32 %v2870_v50, %v4233_v42  ;;  %v2873_v3 = vadd.f32 %v2872_v63, %v2871_v53 }
 0x24f   : > { %v1790_v39 = vmax.f32 %v1718_v40, 0.0  ;;  %v1721_v8 = vadd.f32 %v2873_v3, %v4236_v15 }
 0x251   : > { %v1791_v61 = vmax.f32 %v1721_v8, 0.0  ;;  %v2874_v56 = vpop.f32.mrb[88].mxu0  ;;  %2972 = vmatprep.mubr.msk.f32.mxu1 %vm1812_vm0, %v1790_v39 }
 0x252   : > { %v2875_v16 = vpop.f32.mrb[89].mxu0 }
 0x253   : > { %v2876_v2 = vadd.f32 %v2875_v16, %v2874_v56  ;;  %v2877_v7 = vpop.f32.mrb[90].mxu0  ;;  %2973 = vmatmul.mubr.msk.f32.gmra.mrb[98].mxu1 %vm1812_vm0, %v1791_v61 }
 0x254   : > { %v2878_v62 = vpop.f32.mrb[91].mxu0 }
 0x255   : > { %v1726_v60 = vadd.f32 %v2876_v2, %v4245_v51  ;;  %v2879_v4 = vadd.f32 %v2878_v62, %v2877_v7 }
 0x257   : > { %v1792_v10 = vmax.f32 %v1726_v60, 0.0  ;;  %v1729_v42 = vadd.f32 %v2879_v4, %v4248_v21  ;;  %v3593_v4 = vmov 0.0  }
 0x258   : > { %321 = vst.msk [vmem:[#allocation2] sm:$0x1] %vm320_vm2, %v3593_v4 }
 0x259   : > { %v1793_v11 = vmax.f32 %v1729_v42, 0.0  ;;  %v2880_v32 = vpop.f32.mrb[92].mxu0  ;;  %2975 = vmatprep.mubr.msk.f32.mxu1 %vm1812_vm0, %v1792_v10 }
 0x25a   : > { %v2881_v15 = vpop.f32.mrb[93].mxu0 }
 0x25b   : > { %v2882_v47 = vadd.f32 %v2881_v15, %v2880_v32  ;;  %v2883_v24 = vpop.f32.mrb[94].mxu0  ;;  %2976 = vmatmul.mubr.msk.f32.gmra.mrb[100].mxu1 %vm1812_vm0, %v1793_v11 }
 0x25c   : > { %v2884_v37 = vpop.f32.mrb[95].mxu0 }
 0x25d   : > { %v1734_v9 = vadd.f32 %v2882_v47, %v4257_v55  ;;  %v2885_v34 = vadd.f32 %v2884_v37, %v2883_v24 }
 0x25f   : > { %v1794_v52 = vmax.f32 %v1734_v9, 0.0  ;;  %v1737_v51 = vadd.f32 %v2885_v34, %v4260_v46 }
 0x261   : > { %v1795_v12 = vmax.f32 %v1737_v51, 0.0  ;;  %v2886_v23 = vpop.f32.mrb[96].mxu0  ;;  %2978 = vmatprep.mubr.msk.f32.mxu1 %vm1812_vm0, %v1794_v52 }
 0x262   : > { %v2887_v21 = vpop.f32.mrb[97].mxu0 }
 0x263   : > { %v2888_v20 = vadd.f32 %v2887_v21, %v2886_v23  ;;  %v2889_v18 = vpop.f32.mrb[98].mxu0  ;;  %2979 = vmatmul.mubr.msk.f32.gmra.mrb[102].mxu1 %vm1812_vm0, %v1795_v12 }
 0x264   : > { %v2890_v6 = vpop.f32.mrb[99].mxu0 }
 0x265   : > { %v1742_v25 = vadd.f32 %v2888_v20, %v4269_v5  ;;  %v2891_v57 = vadd.f32 %v2890_v6, %v2889_v18 }
 0x267   : > { %v1796_v27 = vmax.f32 %v1742_v25, 0.0  ;;  %v1745_v55 = vadd.f32 %v2891_v57, %v4272_v22 }
 0x269   : > { %v1797_v26 = vmax.f32 %v1745_v55, 0.0  ;;  %v2892_v44 = vpop.f32.mrb[100].mxu0  ;;  %2981 = vmatprep.mubr.msk.f32.mxu1 %vm1812_vm0, %v1796_v27 }
 0x26a   : > { %v2893_v46 = vpop.f32.mrb[101].mxu0 }
 0x26b   : > { %v2894_v19 = vadd.f32 %v2893_v46, %v2892_v44  ;;  %v2895_v31 = vpop.f32.mrb[102].mxu0  ;;  %2982 = vmatmul.mubr.msk.f32.gmra.mrb[104].mxu1 %vm1812_vm0, %v1797_v26 }
 0x26c   : > { %v2896_v59 = vpop.f32.mrb[103].mxu0 }
 0x26d   : > { %v1750_v14 = vadd.f32 %v2894_v19, %v4281_v54  ;;  %v2897_v38 = vadd.f32 %v2896_v59, %v2895_v31 }
 0x26f   : > { %v1798_v30 = vmax.f32 %v1750_v14, 0.0  ;;  %v1753_v5 = vadd.f32 %v2897_v38, %v4284_v43 }
 0x271   : > { %v1799_v36 = vmax.f32 %v1753_v5, 0.0  ;;  %v2898_v0 = vpop.f32.mrb[104].mxu0  ;;  %2984 = vmatprep.mubr.msk.f32.mxu1 %vm1812_vm0, %v1798_v30 }
 0x272   : > { %v2899_v22 = vpop.f32.mrb[105].mxu0 }
 0x273   : > { %v2900_v1 = vadd.f32 %v2899_v22, %v2898_v0  ;;  %v2901_v41 = vpop.f32.mrb[106].mxu0  ;;  %2985 = vmatmul.mubr.msk.f32.gmra.mrb[106].mxu1 %vm1812_vm0, %v1799_v36 }
 0x274   : > { %v2902_v33 = vpop.f32.mrb[107].mxu0 }
 0x275   : > { %v1758_v58 = vadd.f32 %v2900_v1, %v4293_v45  ;;  %v2903_v17 = vadd.f32 %v2902_v33, %v2901_v41 }
 0x277   : > { %v1800_v35 = vmax.f32 %v1758_v58, 0.0  ;;  %v1761_v54 = vadd.f32 %v2903_v17, %v4296_v13  ;;  %v4345_v13 = vld [vmem:[#allocation9] ss:$0 sm:$0xff] }
 0x279   : > { %v1801_v48 = vmax.f32 %v1761_v54, 0.0  ;;  %v2904_v49 = vpop.f32.mrb[108].mxu0  ;;  %2987 = vmatprep.mubr.msk.f32.mxu1 %vm1812_vm0, %v1800_v35 }
 0x27a   : > { %v2905_v43 = vpop.f32.mrb[109].mxu0 }
 0x27b   : > { %v2906_v50 = vadd.f32 %v2905_v43, %v2904_v49  ;;  %v2907_v53 = vpop.f32.mrb[110].mxu0  ;;  %2988 = vmatmul.mubr.msk.f32.gmra.mrb[108].mxu1 %vm1812_vm0, %v1801_v48 }
 0x27c   : > { %v2908_v63 = vpop.f32.mrb[111].mxu0 }
 0x27d   : > { %v1766_v40 = vadd.f32 %v2906_v50, %v4305_v28  ;;  %v2909_v3 = vadd.f32 %v2908_v63, %v2907_v53 }
 0x27f   : > { %v1802_v39 = vmax.f32 %v1766_v40, 0.0  ;;  %v1769_v45 = vadd.f32 %v2909_v3, %v4308_v29 }
 0x281   : > { %v1803_v8 = vmax.f32 %v1769_v45, 0.0  ;;  %2990 = vmatprep.mubr.msk.f32.mxu1 %vm1812_vm0, %v1802_v39 }
 0x283   : > { %2991 = vmatmul.mubr.msk.f32.gmra.mrb[110].mxu1 %vm1812_vm0, %v1803_v8 }
 0x2de   : > { %v2947_v61 = vpop.f32.mrb[80].mxu1 }
 0x2df   : > { %v1981_v56 = vadd.f32 %v2947_v61, %v4345_v13  ;;  %v1975_v16 = vpop.f32.mrb[81].mxu1 }
 0x2e0   : > { %v1976_v2 = vadd.f32 %v4345_v13, %v1975_v16 }
 0x2e1   : > { %v2135_v7 = vmax.f32 %v1981_v56, 0.0 }
 0x2e2   : > { %v2134_v28 = vmax.f32 %v1976_v2, 0.0 }
 0x2e3   : > { %v2168_v62 = vsel %vm2166_vm1, %v2135_v7, 0.0 }
 0x2e4   : > { %v2167_v29 = vsel %vm2166_vm1, %v2134_v28, 0.0 }
 0x2e5   : > { %v2169_v60 = vadd.f32 %v2168_v62, %v2167_v29 }
 0x2e6   : > { %v2950_v10 = vpop.f32.mrb[82].mxu1 }
 0x2e7   : > { %v1991_v42 = vadd.f32 %v2950_v10, %v4345_v13  ;;  %v1985_v11 = vpop.f32.mrb[83].mxu1 }
 0x2e8   : > { %v1986_v32 = vadd.f32 %v4345_v13, %v1985_v11 }
 0x2e9   : > { %v2137_v15 = vmax.f32 %v1991_v42, 0.0 }
 0x2ea   : > { %v2136_v47 = vmax.f32 %v1986_v32, 0.0 }
 0x2eb   : > { %v2172_v9 = vsel %vm2166_vm1, %v2137_v15, 0.0 }
 0x2ec   : > { %v2170_v24 = vsel %vm2166_vm1, %v2136_v47, 0.0 }
 0x2ed   : > { %v2171_v37 = vadd.f32 %v2170_v24, %v2169_v60 }
 0x2ee   : > { %v2953_v34 = vpop.f32.mrb[84].mxu1 }
 0x2ef   : > { %v2001_v52 = vadd.f32 %v2953_v34, %v4345_v13  ;;  %v1995_v51 = vpop.f32.mrb[85].mxu1  ;;  %v2173_v12 = vadd.f32 %v2172_v9, %v2171_v37 }
 0x2f0   : > { %v1996_v23 = vadd.f32 %v4345_v13, %v1995_v51 }
 0x2f1   : > { %v2139_v21 = vmax.f32 %v2001_v52, 0.0 }
 0x2f2   : > { %v2138_v20 = vmax.f32 %v1996_v23, 0.0 }
 0x2f3   : > { %v2176_v25 = vsel %vm2166_vm1, %v2139_v21, 0.0 }
 0x2f4   : > { %v2174_v18 = vsel %vm2166_vm1, %v2138_v20, 0.0 }
 0x2f5   : > { %v2175_v6 = vadd.f32 %v2174_v18, %v2173_v12 }
 0x2f6   : > { %v2956_v57 = vpop.f32.mrb[86].mxu1 }
 0x2f7   : > { %v2011_v27 = vadd.f32 %v2956_v57, %v4345_v13  ;;  %v2005_v55 = vpop.f32.mrb[87].mxu1  ;;  %v2177_v26 = vadd.f32 %v2176_v25, %v2175_v6 }
 0x2f8   : > { %v2006_v44 = vadd.f32 %v4345_v13, %v2005_v55 }
 0x2f9   : > { %v2141_v46 = vmax.f32 %v2011_v27, 0.0 }
 0x2fa   : > { %v2140_v19 = vmax.f32 %v2006_v44, 0.0 }
 0x2fb   : > { %v2180_v14 = vsel %vm2166_vm1, %v2141_v46, 0.0 }
 0x2fc   : > { %v2178_v31 = vsel %vm2166_vm1, %v2140_v19, 0.0 }
 0x2fd   : > { %v2179_v59 = vadd.f32 %v2178_v31, %v2177_v26 }
 0x2fe   : > { %v2959_v38 = vpop.f32.mrb[88].mxu1 }
 0x2ff   : > { %v2021_v30 = vadd.f32 %v2959_v38, %v4345_v13  ;;  %v2015_v5 = vpop.f32.mrb[89].mxu1  ;;  %v2181_v36 = vadd.f32 %v2180_v14, %v2179_v59 }
 0x300   : > { %v2016_v0 = vadd.f32 %v4345_v13, %v2015_v5 }
 0x301   : > { %v2143_v22 = vmax.f32 %v2021_v30, 0.0 }
 0x302   : > { %v2142_v1 = vmax.f32 %v2016_v0, 0.0 }
 0x303   : > { %v2184_v58 = vsel %vm2166_vm1, %v2143_v22, 0.0 }
 0x304   : > { %v2182_v41 = vsel %vm2166_vm1, %v2142_v1, 0.0 }
 0x305   : > { %v2183_v33 = vadd.f32 %v2182_v41, %v2181_v36 }
 0x306   : > { %v2962_v17 = vpop.f32.mrb[90].mxu1 }
 0x307   : > { %v2031_v35 = vadd.f32 %v2962_v17, %v4345_v13  ;;  %v2025_v54 = vpop.f32.mrb[91].mxu1  ;;  %v2185_v48 = vadd.f32 %v2184_v58, %v2183_v33 }
 0x308   : > { %v2026_v49 = vadd.f32 %v4345_v13, %v2025_v54 }
 0x309   : > { %v2145_v43 = vmax.f32 %v2031_v35, 0.0 }
 0x30a   : > { %v2144_v50 = vmax.f32 %v2026_v49, 0.0 }
 0x30b   : > { %v2188_v40 = vsel %vm2166_vm1, %v2145_v43, 0.0 }
 0x30c   : > { %v2186_v53 = vsel %vm2166_vm1, %v2144_v50, 0.0 }
 0x30d   : > { %v2187_v63 = vadd.f32 %v2186_v53, %v2185_v48 }
 0x30e   : > { %v2965_v3 = vpop.f32.mrb[92].mxu1 }
 0x30f   : > { %v2041_v39 = vadd.f32 %v2965_v3, %v4345_v13  ;;  %v2035_v45 = vpop.f32.mrb[93].mxu1  ;;  %v2189_v8 = vadd.f32 %v2188_v40, %v2187_v63 }
 0x310   : > { %v2036_v61 = vadd.f32 %v4345_v13, %v2035_v45 }
 0x311   : > { %v2147_v56 = vmax.f32 %v2041_v39, 0.0 }
 0x312   : > { %v2146_v16 = vmax.f32 %v2036_v61, 0.0 }
 0x313   : > { %v2192_v28 = vsel %vm2166_vm1, %v2147_v56, 0.0 }
 0x314   : > { %v2190_v2 = vsel %vm2166_vm1, %v2146_v16, 0.0 }
 0x315   : > { %v2191_v7 = vadd.f32 %v2190_v2, %v2189_v8 }
 0x316   : > { %v2968_v62 = vpop.f32.mrb[94].mxu1 }
 0x317   : > { %v2051_v29 = vadd.f32 %v2968_v62, %v4345_v13  ;;  %v2045_v60 = vpop.f32.mrb[95].mxu1  ;;  %v2193_v4 = vadd.f32 %v2192_v28, %v2191_v7 }
 0x318   : > { %v2046_v10 = vadd.f32 %v4345_v13, %v2045_v60 }
 0x319   : > { %v2149_v42 = vmax.f32 %v2051_v29, 0.0 }
 0x31a   : > { %v2148_v11 = vmax.f32 %v2046_v10, 0.0 }
 0x31b   : > { %v2196_v47 = vsel %vm2166_vm1, %v2149_v42, 0.0 }
 0x31c   : > { %v2194_v32 = vsel %vm2166_vm1, %v2148_v11, 0.0 }
 0x31d   : > { %v2195_v15 = vadd.f32 %v2194_v32, %v2193_v4 }
 0x31e   : > { %v2971_v24 = vpop.f32.mrb[96].mxu1 }
 0x31f   : > { %v2061_v37 = vadd.f32 %v2971_v24, %v4345_v13  ;;  %v2055_v9 = vpop.f32.mrb[97].mxu1  ;;  %v2197_v34 = vadd.f32 %v2196_v47, %v2195_v15 }
 0x320   : > { %v2056_v52 = vadd.f32 %v4345_v13, %v2055_v9 }
 0x321   : > { %v2151_v51 = vmax.f32 %v2061_v37, 0.0 }
 0x322   : > { %v2150_v12 = vmax.f32 %v2056_v52, 0.0 }
 0x323   : > { %v2200_v20 = vsel %vm2166_vm1, %v2151_v51, 0.0 }
 0x324   : > { %v2198_v23 = vsel %vm2166_vm1, %v2150_v12, 0.0 }
 0x325   : > { %v2199_v21 = vadd.f32 %v2198_v23, %v2197_v34 }
 0x326   : > { %v2974_v18 = vpop.f32.mrb[98].mxu1 }
 0x327   : > { %v2071_v6 = vadd.f32 %v2974_v18, %v4345_v13  ;;  %v2065_v25 = vpop.f32.mrb[99].mxu1  ;;  %v2201_v57 = vadd.f32 %v2200_v20, %v2199_v21 }
 0x328   : > { %v2066_v27 = vadd.f32 %v4345_v13, %v2065_v25 }
 0x329   : > { %v2153_v55 = vmax.f32 %v2071_v6, 0.0 }
 0x32a   : > { %v2152_v26 = vmax.f32 %v2066_v27, 0.0 }
 0x32b   : > { %v2204_v19 = vsel %vm2166_vm1, %v2153_v55, 0.0 }
 0x32c   : > { %v2202_v44 = vsel %vm2166_vm1, %v2152_v26, 0.0 }
 0x32d   : > { %v2203_v46 = vadd.f32 %v2202_v44, %v2201_v57 }
 0x32e   : > { %v2977_v31 = vpop.f32.mrb[100].mxu1 }
 0x32f   : > { %v2081_v59 = vadd.f32 %v2977_v31, %v4345_v13  ;;  %v2075_v14 = vpop.f32.mrb[101].mxu1  ;;  %v2205_v38 = vadd.f32 %v2204_v19, %v2203_v46 }
 0x330   : > { %v2076_v30 = vadd.f32 %v4345_v13, %v2075_v14 }
 0x331   : > { %v2155_v5 = vmax.f32 %v2081_v59, 0.0 }
 0x332   : > { %v2154_v36 = vmax.f32 %v2076_v30, 0.0 }
 0x333   : > { %v2208_v1 = vsel %vm2166_vm1, %v2155_v5, 0.0 }
 0x334   : > { %v2206_v0 = vsel %vm2166_vm1, %v2154_v36, 0.0 }
 0x335   : > { %v2207_v22 = vadd.f32 %v2206_v0, %v2205_v38  ;;  %v2236_v38 = vld [vmem:[#allocation2] sm:$0x1] }
 0x336   : > { %v2980_v41 = vpop.f32.mrb[102].mxu1 }
 0x337   : > { %v2091_v33 = vadd.f32 %v2980_v41, %v4345_v13  ;;  %v2085_v58 = vpop.f32.mrb[103].mxu1  ;;  %v2209_v17 = vadd.f32 %v2208_v1, %v2207_v22 }
 0x338   : > { %v2086_v35 = vadd.f32 %v4345_v13, %v2085_v58 }
 0x339   : > { %v2157_v54 = vmax.f32 %v2091_v33, 0.0 }
 0x33a   : > { %v2156_v48 = vmax.f32 %v2086_v35, 0.0 }
 0x33b   : > { %v2212_v50 = vsel %vm2166_vm1, %v2157_v54, 0.0 }
 0x33c   : > { %v2210_v49 = vsel %vm2166_vm1, %v2156_v48, 0.0 }
 0x33d   : > { %v2211_v43 = vadd.f32 %v2210_v49, %v2209_v17 }
 0x33e   : > { %v2983_v53 = vpop.f32.mrb[104].mxu1 }
 0x33f   : > { %v2101_v63 = vadd.f32 %v2983_v53, %v4345_v13  ;;  %v2095_v40 = vpop.f32.mrb[105].mxu1  ;;  %v2213_v3 = vadd.f32 %v2212_v50, %v2211_v43 }
 0x340   : > { %v2096_v39 = vadd.f32 %v4345_v13, %v2095_v40 }
 0x341   : > { %v2159_v45 = vmax.f32 %v2101_v63, 0.0 }
 0x342   : > { %v2158_v8 = vmax.f32 %v2096_v39, 0.0 }
 0x343   : > { %v2216_v16 = vsel %vm2166_vm1, %v2159_v45, 0.0 }
 0x344   : > { %v2214_v61 = vsel %vm2166_vm1, %v2158_v8, 0.0 }
 0x345   : > { %v2215_v56 = vadd.f32 %v2214_v61, %v2213_v3 }
 0x346   : > { %v2986_v2 = vpop.f32.mrb[106].mxu1 }
 0x347   : > { %v2111_v7 = vadd.f32 %v2986_v2, %v4345_v13  ;;  %v2105_v28 = vpop.f32.mrb[107].mxu1  ;;  %v2217_v62 = vadd.f32 %v2216_v16, %v2215_v56 }
 0x348   : > { %v2106_v29 = vadd.f32 %v4345_v13, %v2105_v28 }
 0x349   : > { %v2161_v60 = vmax.f32 %v2111_v7, 0.0 }
 0x34a   : > { %v2160_v4 = vmax.f32 %v2106_v29, 0.0 }
 0x34b   : > { %v2220_v11 = vsel %vm2166_vm1, %v2161_v60, 0.0 }
 0x34c   : > { %v2218_v10 = vsel %vm2166_vm1, %v2160_v4, 0.0 }
 0x34d   : > { %v2219_v42 = vadd.f32 %v2218_v10, %v2217_v62 }
 0x34e   : > { %v2989_v32 = vpop.f32.mrb[108].mxu1 }
 0x34f   : > { %v2121_v15 = vadd.f32 %v2989_v32, %v4345_v13  ;;  %v2115_v47 = vpop.f32.mrb[109].mxu1  ;;  %v2221_v24 = vadd.f32 %v2220_v11, %v2219_v42 }
 0x350   : > { %v2116_v37 = vadd.f32 %v4345_v13, %v2115_v47 }
 0x351   : > { %v2163_v9 = vmax.f32 %v2121_v15, 0.0 }
 0x352   : > { %v2162_v34 = vmax.f32 %v2116_v37, 0.0 }
 0x353   : > { %v2224_v12 = vsel %vm2166_vm1, %v2163_v9, 0.0 }
 0x354   : > { %v2222_v52 = vsel %vm2166_vm1, %v2162_v34, 0.0 }
 0x355   : > { %v2223_v51 = vadd.f32 %v2222_v52, %v2221_v24 }
 0x356   : > { %v2992_v23 = vpop.f32.mrb[110].mxu1 }
 0x357   : > { %v2131_v21 = vadd.f32 %v2992_v23, %v4345_v13  ;;  %v2125_v20 = vpop.f32.mrb[111].mxu1  ;;  %v2225_v18 = vadd.f32 %v2224_v12, %v2223_v51 }
 0x358   : > { %v2126_v6 = vadd.f32 %v4345_v13, %v2125_v20 }
 0x359   : > { %v2165_v25 = vmax.f32 %v2131_v21, 0.0 }
 0x35a   : > { %v2164_v57 = vmax.f32 %v2126_v6, 0.0 }
 0x35b   : > { %v2228_v26 = vsel %vm2166_vm1, %v2165_v25, 0.0 }
 0x35c   : > { %v2226_v27 = vsel %vm2166_vm1, %v2164_v57, 0.0 }
 0x35d   : > { %v2227_v55 = vadd.f32 %v2226_v27, %v2225_v18 }
 0x35f   : > { %v2229_v44 = vadd.f32 %v2228_v26, %v2227_v55 }
 0x361   : > { %v2230_v46 = vrot.slane %v2229_v44, 4 }
 0x363   : > { %v2231_v19 = vadd.f32 %v2230_v46, %v2229_v44 }
 0x365   : > { %v2232_v31 = vrot.slane %v2231_v19, 2 }
 0x367   : > { %v2233_v59 = vadd.f32 %v2232_v31, %v2231_v19 }
 0x369   : > { %v2234_v14 = vrot.slane %v2233_v59, 1 }
 0x36b   : > { %v2235_v30 = vadd.f32 %v2234_v14, %v2233_v59 }
 0x36d   : > { %v2237_v5 = vadd.f32 %v2236_v38, %v2235_v30 }
 0x36f   : > { %2239 = vst.msk [vmem:[#allocation2] sm:$0x1] %vm320_vm2, %v2237_v5 }
 0x376   : > { %v2243_v13 = vld [vmem:[#allocation2] sm:$0x1] }
 0x377   : > { %v2244_v36 = vmul.f32 0.001953125, %v2243_v13 }
 0x379   : > { %2245 = vst.msk [vmem:[%s310_s16] sm:$0x1] %vm320_vm2, %v2244_v36 }
 0x37a   : > { %3468 = shalt.err (!%p3465_p5)
}
 0x37b   : > { %s3469_s17 = scalar_lea.hbm %s4419_s2, 16  ;;  %s3473_s10 = scalar_lea.hbm %s4527_s29, 64 }
 0x37c   : > { %p3470_p8 = scmp.ne.s32.totalorder %s4419_s2, %s3469_s17  ;;  %p3474_p6 = scmp.lt.u32.totalorder %s4419_s2, %s4527_s29 }
 0x37d   : > { %p3475_p10 = scmp.lt.u32.totalorder %s3473_s10, %s3469_s17  ;;  %p3477_p11 = scmp.lt.u32.totalorder %s3469_s17, %s4419_s2 }
 0x37e   : > { %p3471_p12 = pnand %p3470_p8, %p4528_p4 }
 0x37f   : > { %p3476_p0 = por %p3475_p10, %p3474_p6 }
 0x380   : > { %p3472_p2 = pneg %p3471_p12 }
 0x381   : > { %p3478_p1 = por %p3477_p11, %p3476_p0 }
 0x383   : > { %p3479_p13 = pnand %p3478_p1, %p3472_p2 }
 0x385   : > { %3482 = shalt.err (!%p3479_p13)
}
 0x386   : > { %3027 = dma.vmem_to_hbm [thread:$0]  (%p4528_p4), %s4421_s5, 16, %s4419_s2, %s2247_s25  }
 0x387 PF: > { %s4529_s13 = sld [smem:[#allocation17_spill]]  ;;  %s4530_s28 = sld [smem:[#allocation16_spill]] }
 0x388   : > { %s4531_s16 = sld [smem:[#allocation19_spill]] }
 0x38d   : > { %p3054_p3 = scmp.ge.s32.totalorder %s4529_s13, 2  ;;  %s2273_s4 = sand.u32 1, %s4530_s28  }
 0x38e   : > { %p4532_p7 = scmp.ne.s32.totalorder %s4531_s16, 0  ;;  %s2274_s11 = scalar_lea.sflag [#allocation5], %s2273_s4 }
 0x390   : > { %p3044_p9 = pnand %p3054_p3, %p4532_p7 }
 0x392   : > { %3540 = dma.done.wait (!%p3044_p9), %s2274_s11, 16  }
 0x393   : > { %3542 = vsyncadd (!%p3044_p9), %s2274_s11, 4294967280  ;;  %s23_s28 = sadd.s32 1, %s4529_s13   ;;  %s4533_s5 = sld [smem:[#allocation20_spill]] }
 0x394   : > { %p20_p5 = scmp.ge.s32.totalorder %s23_s28, 6   ;;  %s4534_s18 = smov %s3549_s19 }
 0x395   : > { %s4535_s19 = smov %s3553_s20  ;;  %s4536_s20 = smov %s3824_s3 }
 0x396   : > { %s4537_s21 = smov %s3561_s22  ;;  %s4538_s22 = smov %s3565_s23 }
 0x397   : > { %s4539_s23 = smov %s3819_s9  ;;  %s4540_s24 = smov %s3577_s26 }
 0x398   : > { %s4541_s25 = smov %s3581_s27  ;;  %s4542_s26 = smov %s4545_s14 }
 0x399   : > { %s4543_s27 = smov %s4533_s5  ;;  %22 = sbr.rel (!%p20_p5) target bundleno = 16 (0x10), region = 105 }
 0x3a0   :  { %2278 = vsyncpa [#allocation4], 1 }
 0x3a1   :  { %2280 = vsyncpa [#allocation4 + $0x1], 1 }
 0x3a2   :  { %2281 = vsyncpa [#allocation7], 1 }
 0x3a3   :  { %2282 = vsyncpa [#allocation10], 1 }
 0x3a4   :  { %2283 = vsyncpa [#allocation5], 1 }
 0x3a5   :  { %2285 = vsyncpa [#allocation5 + $0x1], 1 }

</bundles_post_ra>
